<compile_context>
chip_gen: v5e
topology: v5e:2x2
jax: 0.10.0
libtpu: 0.0.40
codegen_flags: <defaults>
</compile_context>

<pallas_src>
import jax
import jax.numpy as jnp
from jax.experimental import pallas as pl
from jax.experimental.pallas import tpu as pltpu

HIDDEN = 512
MAX_TILE = 1024   # max batch rows per grid step


def _round_up(x, m):
    return ((x + m - 1) // m) * m


def _choose_tile(batch):
    """Batch tile: <=MAX_TILE rows, >=2 grid steps when possible (v7x megacore),
    multiple of 16 (bf16 sublane packing), minimal padding waste."""
    steps = max(1, pl.cdiv(batch, MAX_TILE))
    if batch >= 32:                      # two tiles of >=16 rows each
        steps = max(steps, 2)
    tb = _round_up(pl.cdiv(batch, steps), 16)
    padded = _round_up(batch, tb)
    return tb, padded


def _critic_kernel(s_ref, a_ref,
                   w1s_ref, w1a_ref, b1_ref, w2_ref, b2_ref, w3t_ref,
                   w4s_ref, w4a_ref, b4_ref, w5_ref, b5_ref, w6t_ref,
                   b36_ref, q_ref):
    """Twin-Q MLP: per-head bf16 MXU layers 1-2 (f32 accum), VPU/XLU layer 3."""
    s = s_ref[...]          # already bf16 (cast folded into wrapper padding)
    a = a_ref[...]

    # ---------------- Q1 head ----------------
    h = (jnp.dot(s, w1s_ref[...], preferred_element_type=jnp.float32)
         + jnp.dot(a, w1a_ref[...], preferred_element_type=jnp.float32)
         + b1_ref[...])
    h = jnp.maximum(h, 0.0)                                       # f32 epilogue
    h = (jnp.dot(h.astype(jnp.bfloat16), w2_ref[...],
                 preferred_element_type=jnp.float32) + b2_ref[...])
    h = jnp.maximum(h, 0.0)
    # layer 3 on VPU (broadcast mul) + XLU (lane reduce); h stays f32
    q1 = jnp.sum(h * w3t_ref[...], axis=-1, keepdims=True)

    # ---------------- Q2 head ----------------
    g = (jnp.dot(s, w4s_ref[...], preferred_element_type=jnp.float32)
         + jnp.dot(a, w4a_ref[...], preferred_element_type=jnp.float32)
         + b4_ref[...])
    g = jnp.maximum(g, 0.0)
    g = (jnp.dot(g.astype(jnp.bfloat16), w5_ref[...],
                 preferred_element_type=jnp.float32) + b5_ref[...])
    g = jnp.maximum(g, 0.0)
    q2 = jnp.sum(g * w6t_ref[...], axis=-1, keepdims=True)

    q_ref[...] = (jnp.concatenate([q1, q2], axis=-1)
                  + b36_ref[...]).astype(q_ref.dtype)


def critic_forward(state, action, p):
    """Pallas equivalent of Critic.forward(state, action) -> (q1, q2)."""
    batch, state_dim = state.shape
    action_dim = action.shape[1]
    in_dim = state_dim + action_dim

    tb, padded = _choose_tile(batch)
    if padded != batch:
        pad = padded - batch
        state = jnp.pad(state, ((0, pad), (0, 0)))
        action = jnp.pad(action, ((0, pad), (0, 0)))
    # Fold the input cast into the (already materializing) pad step.
    state = state.astype(jnp.bfloat16)
    action = action.astype(jnp.bfloat16)

    grid = (padded // tb,)

    def const_spec(arr):
        return pl.BlockSpec(arr.shape, lambda i: (0, 0))

    flops = 2 * padded * 2 * (in_dim * HIDDEN + HIDDEN * HIDDEN + HIDDEN)
    weight_bytes = 2 * (in_dim * HIDDEN + HIDDEN * HIDDEN) * 2 + 2 * HIDDEN * 4
    bias_bytes = (2 * HIDDEN + 2 * HIDDEN + 2) * 4
    io_bytes = padded * in_dim * 2 + padded * 2 * 4
    cost = pl.CostEstimate(flops=flops, transcendentals=0,
                           bytes_accessed=weight_bytes + bias_bytes + io_bytes)

    q = pl.pallas_call(
        _critic_kernel,
        out_shape=jax.ShapeDtypeStruct((padded, 2), jnp.float32),
        grid=grid,
        in_specs=[
            pl.BlockSpec((tb, state_dim), lambda i: (i, 0)),
            pl.BlockSpec((tb, action_dim), lambda i: (i, 0)),
            const_spec(p["w1s"]), const_spec(p["w1a"]), const_spec(p["b1"]),
            const_spec(p["w2"]), const_spec(p["b2"]), const_spec(p["w3t"]),
            const_spec(p["w4s"]), const_spec(p["w4a"]), const_spec(p["b4"]),
            const_spec(p["w5"]), const_spec(p["b5"]), const_spec(p["w6t"]),
            const_spec(p["b36"]),
        ],
        out_specs=pl.BlockSpec((tb, 2), lambda i: (i, 0)),
        compiler_params=pltpu.CompilerParams(
            dimension_semantics=("parallel",),
            vmem_limit_bytes=32 * 1024 * 1024),
        cost_estimate=cost,
    )(state, action,
      p["w1s"], p["w1a"], p["b1"], p["w2"], p["b2"], p["w3t"],
      p["w4s"], p["w4a"], p["b4"], p["w5"], p["b5"], p["w6t"],
      p["b36"])

    q = q[:batch]
    return q[:, 0:1], q[:, 1:2]


def init_critic_params(key, state_dim, action_dim):
    """f32 init matching PyTorch nn.Linear defaults:
    W, b ~ U(-1/sqrt(fan_in), 1/sqrt(fan_in)). Weights stored as [in, out]."""
    in_dim = state_dim + action_dim
    layer_dims = [
        ("w1", "b1", in_dim, HIDDEN),
        ("w2", "b2", HIDDEN, HIDDEN),
        ("w3", "b3", HIDDEN, 1),
        ("w4", "b4", in_dim, HIDDEN),
        ("w5", "b5", HIDDEN, HIDDEN),
        ("w6", "b6", HIDDEN, 1),
    ]
    params = {}
    keys = jax.random.split(key, 2 * len(layer_dims))
    for i, (wn, bn, fan_in, fan_out) in enumerate(layer_dims):
        bound = 1.0 / jnp.sqrt(jnp.float32(fan_in))
        params[wn] = jax.random.uniform(
            keys[2 * i], (fan_in, fan_out), jnp.float32, -bound, bound)
        params[bn] = jax.random.uniform(
            keys[2 * i + 1], (1, fan_out), jnp.float32, -bound, bound)
    return params


def fuse_critic_params(params, state_dim):
    """Precompute the bf16 / layout-fused parameter set consumed by the kernel."""
    return {
        # layer 1 / 4 weights split row-wise: s@Ws + a@Wa == cat(s,a)@W
        "w1s": params["w1"][:state_dim].astype(jnp.bfloat16),
        "w1a": params["w1"][state_dim:].astype(jnp.bfloat16),
        "b1": params["b1"],
        "w4s": params["w4"][:state_dim].astype(jnp.bfloat16),
        "w4a": params["w4"][state_dim:].astype(jnp.bfloat16),
        "b4": params["b4"],
        "w2": params["w2"].astype(jnp.bfloat16),
        "b2": params["b2"],
        "w5": params["w5"].astype(jnp.bfloat16),
        "b5": params["b5"],
        # layer 3 / 6 as f32 weight rows for the VPU/XLU epilogue
        "w3t": params["w3"].reshape(1, HIDDEN),
        "w6t": params["w6"].reshape(1, HIDDEN),
        "b36": jnp.concatenate([params["b3"], params["b6"]], axis=1),  # [1, 2]
    }


def critic_reference(state, action, params):
    """Pure-JAX reference emulating the kernel's math:
    bf16-weight / f32-accum layers 1-2, f32 layer 3."""
    def lin_bf16(x, w, b):
        return jnp.dot(x.astype(jnp.bfloat16), w.astype(jnp.bfloat16),
                       preferred_element_type=jnp.float32) + b
    sa = jnp.concatenate([state, action], axis=1)
    h = jax.nn.relu(lin_bf16(sa, params["w1"], params["b1"]))
    h = jax.nn.relu(lin_bf16(h, params["w2"], params["b2"]))
    q1 = jnp.dot(h, params["w3"]) + params["b3"]
    g = jax.nn.relu(lin_bf16(sa, params["w4"], params["b4"]))
    g = jax.nn.relu(lin_bf16(g, params["w5"], params["b5"]))
    q2 = jnp.dot(g, params["w6"]) + params["b6"]
    return q1, q2


if __name__ == "__main__":
    state_dim, action_dim, batch = 16, 8, 8

    key = jax.random.PRNGKey(0)
    k_params, k_state, k_action = jax.random.split(key, 3)

    params = init_critic_params(k_params, state_dim, action_dim)
    fused = fuse_critic_params(params, state_dim)
    state = jax.random.normal(k_state, (batch, state_dim), jnp.float32)
    action = jax.random.normal(k_action, (batch, action_dim), jnp.float32)

    q1, q2 = jax.jit(critic_forward)(state, action, fused)
    jax.block_until_ready((q1, q2))

    r1, r2 = critic_reference(state, action, params)
    assert q1.shape == (batch, 1) and q2.shape == (batch, 1)
    assert jnp.allclose(q1, r1, atol=1e-2, rtol=1e-2)
    assert jnp.allclose(q2, r2, atol=1e-2, rtol=1e-2)

    print("KERNEL_OK")
</pallas_src>

<mosaic_0001>
module attributes {stable_mosaic.version = 11 : i64} {
  func.func @_critic_kernel(%arg0: i32, %arg1: memref<16x16xbf16, #tpu.memory_space<vmem>>, %arg2: memref<16x8xbf16, #tpu.memory_space<vmem>>, %arg3: memref<16x512xbf16, #tpu.memory_space<vmem>>, %arg4: memref<8x512xbf16, #tpu.memory_space<vmem>>, %arg5: memref<1x512xf32, #tpu.memory_space<vmem>>, %arg6: memref<512x512xbf16, #tpu.memory_space<vmem>>, %arg7: memref<1x512xf32, #tpu.memory_space<vmem>>, %arg8: memref<1x512xf32, #tpu.memory_space<vmem>>, %arg9: memref<16x512xbf16, #tpu.memory_space<vmem>>, %arg10: memref<8x512xbf16, #tpu.memory_space<vmem>>, %arg11: memref<1x512xf32, #tpu.memory_space<vmem>>, %arg12: memref<512x512xbf16, #tpu.memory_space<vmem>>, %arg13: memref<1x512xf32, #tpu.memory_space<vmem>>, %arg14: memref<1x512xf32, #tpu.memory_space<vmem>>, %arg15: memref<1x2xf32, #tpu.memory_space<vmem>>, %arg16: memref<16x2xf32, #tpu.memory_space<vmem>>) attributes {dimension_semantics = [#tpu.dimension_semantics<parallel>], iteration_bounds = array<i64: 1>, scalar_prefetch = 0 : i64, scratch_operands = 0 : i64, tpu.core_type = #tpu.core_type<tc>, window_params = [{transform_indices = @transform_0, window_bounds = array<i64: 16, 16>}, {transform_indices = @transform_1, window_bounds = array<i64: 16, 8>}, {pipeline_mode = #tpu.pipeline_mode<synchronous>, transform_indices = @transform_2, window_bounds = array<i64: 16, 512>}, {pipeline_mode = #tpu.pipeline_mode<synchronous>, transform_indices = @transform_3, window_bounds = array<i64: 8, 512>}, {pipeline_mode = #tpu.pipeline_mode<synchronous>, transform_indices = @transform_4, window_bounds = array<i64: 1, 512>}, {pipeline_mode = #tpu.pipeline_mode<synchronous>, transform_indices = @transform_5, window_bounds = array<i64: 512, 512>}, {pipeline_mode = #tpu.pipeline_mode<synchronous>, transform_indices = @transform_6, window_bounds = array<i64: 1, 512>}, {pipeline_mode = #tpu.pipeline_mode<synchronous>, transform_indices = @transform_7, window_bounds = array<i64: 1, 512>}, {pipeline_mode = #tpu.pipeline_mode<synchronous>, transform_indices = @transform_8, window_bounds = array<i64: 16, 512>}, {pipeline_mode = #tpu.pipeline_mode<synchronous>, transform_indices = @transform_9, window_bounds = array<i64: 8, 512>}, {pipeline_mode = #tpu.pipeline_mode<synchronous>, transform_indices = @transform_10, window_bounds = array<i64: 1, 512>}, {pipeline_mode = #tpu.pipeline_mode<synchronous>, transform_indices = @transform_11, window_bounds = array<i64: 512, 512>}, {pipeline_mode = #tpu.pipeline_mode<synchronous>, transform_indices = @transform_12, window_bounds = array<i64: 1, 512>}, {pipeline_mode = #tpu.pipeline_mode<synchronous>, transform_indices = @transform_13, window_bounds = array<i64: 1, 512>}, {pipeline_mode = #tpu.pipeline_mode<synchronous>, transform_indices = @transform_14, window_bounds = array<i64: 1, 2>}, {transform_indices = @transform_15, window_bounds = array<i64: 16, 2>}]} {
    %c0 = arith.constant 0 : index
    %c0_0 = arith.constant 0 : index
    %0 = vector.load %arg1[%c0, %c0_0] : memref<16x16xbf16, #tpu.memory_space<vmem>>, vector<16x16xbf16>
    %c0_1 = arith.constant 0 : index
    %c0_2 = arith.constant 0 : index
    %1 = vector.load %arg2[%c0_1, %c0_2] : memref<16x8xbf16, #tpu.memory_space<vmem>>, vector<16x8xbf16>
    %c0_3 = arith.constant 0 : index
    %c0_4 = arith.constant 0 : index
    %2 = vector.load %arg3[%c0_3, %c0_4] : memref<16x512xbf16, #tpu.memory_space<vmem>>, vector<16x512xbf16>
    %cst = arith.constant dense<0.000000e+00> : vector<16x512xf32>
    %3 = tpu.matmul %0, %2, %cst {dimension_numbers = #tpu.dot_dimension_numbers<[1], [0], [0], [1], [0, 0, 1, 1], [], []>} : vector<16x16xbf16>, vector<16x512xbf16>, vector<16x512xf32> -> vector<16x512xf32>
    %c0_5 = arith.constant 0 : index
    %c0_6 = arith.constant 0 : index
    %4 = vector.load %arg4[%c0_5, %c0_6] : memref<8x512xbf16, #tpu.memory_space<vmem>>, vector<8x512xbf16>
    %cst_7 = arith.constant dense<0.000000e+00> : vector<16x512xf32>
    %5 = tpu.matmul %1, %4, %cst_7 {dimension_numbers = #tpu.dot_dimension_numbers<[1], [0], [0], [1], [0, 0, 1, 1], [], []>} : vector<16x8xbf16>, vector<8x512xbf16>, vector<16x512xf32> -> vector<16x512xf32>
    %6 = arith.addf %3, %5 : vector<16x512xf32>
    %c0_8 = arith.constant 0 : index
    %c0_9 = arith.constant 0 : index
    %7 = vector.load %arg5[%c0_8, %c0_9] : memref<1x512xf32, #tpu.memory_space<vmem>>, vector<1x512xf32>
    %8 = vector.broadcast %7 : vector<1x512xf32> to vector<16x512xf32>
    %9 = arith.addf %6, %8 : vector<16x512xf32>
    %cst_10 = arith.constant 0.000000e+00 : f32
    %10 = vector.broadcast %cst_10 : f32 to vector<16x512xf32>
    %11 = arith.maximumf %9, %10 : vector<16x512xf32>
    %12 = arith.truncf %11 : vector<16x512xf32> to vector<16x512xbf16>
    %c0_11 = arith.constant 0 : index
    %c0_12 = arith.constant 0 : index
    %13 = vector.load %arg6[%c0_11, %c0_12] : memref<512x512xbf16, #tpu.memory_space<vmem>>, vector<512x512xbf16>
    %cst_13 = arith.constant dense<0.000000e+00> : vector<16x512xf32>
    %14 = tpu.matmul %12, %13, %cst_13 {dimension_numbers = #tpu.dot_dimension_numbers<[1], [0], [0], [1], [0, 0, 1, 1], [], []>} : vector<16x512xbf16>, vector<512x512xbf16>, vector<16x512xf32> -> vector<16x512xf32>
    %c0_14 = arith.constant 0 : index
    %c0_15 = arith.constant 0 : index
    %15 = vector.load %arg7[%c0_14, %c0_15] : memref<1x512xf32, #tpu.memory_space<vmem>>, vector<1x512xf32>
    %16 = vector.broadcast %15 : vector<1x512xf32> to vector<16x512xf32>
    %17 = arith.addf %14, %16 : vector<16x512xf32>
    %cst_16 = arith.constant 0.000000e+00 : f32
    %18 = vector.broadcast %cst_16 : f32 to vector<16x512xf32>
    %19 = arith.maximumf %17, %18 : vector<16x512xf32>
    %c0_17 = arith.constant 0 : index
    %c0_18 = arith.constant 0 : index
    %20 = vector.load %arg8[%c0_17, %c0_18] : memref<1x512xf32, #tpu.memory_space<vmem>>, vector<1x512xf32>
    %21 = vector.broadcast %20 : vector<1x512xf32> to vector<16x512xf32>
    %22 = arith.mulf %19, %21 : vector<16x512xf32>
    %cst_19 = arith.constant dense<0.000000e+00> : vector<16xf32>
    %23 = vector.multi_reduction <add>, %22, %cst_19 [1] : vector<16x512xf32> to vector<16xf32>
    %24 = vector.shape_cast %23 : vector<16xf32> to vector<16x1xf32>
    %c0_20 = arith.constant 0 : index
    %c0_21 = arith.constant 0 : index
    %25 = vector.load %arg9[%c0_20, %c0_21] : memref<16x512xbf16, #tpu.memory_space<vmem>>, vector<16x512xbf16>
    %cst_22 = arith.constant dense<0.000000e+00> : vector<16x512xf32>
    %26 = tpu.matmul %0, %25, %cst_22 {dimension_numbers = #tpu.dot_dimension_numbers<[1], [0], [0], [1], [0, 0, 1, 1], [], []>} : vector<16x16xbf16>, vector<16x512xbf16>, vector<16x512xf32> -> vector<16x512xf32>
    %c0_23 = arith.constant 0 : index
    %c0_24 = arith.constant 0 : index
    %27 = vector.load %arg10[%c0_23, %c0_24] : memref<8x512xbf16, #tpu.memory_space<vmem>>, vector<8x512xbf16>
    %cst_25 = arith.constant dense<0.000000e+00> : vector<16x512xf32>
    %28 = tpu.matmul %1, %27, %cst_25 {dimension_numbers = #tpu.dot_dimension_numbers<[1], [0], [0], [1], [0, 0, 1, 1], [], []>} : vector<16x8xbf16>, vector<8x512xbf16>, vector<16x512xf32> -> vector<16x512xf32>
    %29 = arith.addf %26, %28 : vector<16x512xf32>
    %c0_26 = arith.constant 0 : index
    %c0_27 = arith.constant 0 : index
    %30 = vector.load %arg11[%c0_26, %c0_27] : memref<1x512xf32, #tpu.memory_space<vmem>>, vector<1x512xf32>
    %31 = vector.broadcast %30 : vector<1x512xf32> to vector<16x512xf32>
    %32 = arith.addf %29, %31 : vector<16x512xf32>
    %cst_28 = arith.constant 0.000000e+00 : f32
    %33 = vector.broadcast %cst_28 : f32 to vector<16x512xf32>
    %34 = arith.maximumf %32, %33 : vector<16x512xf32>
    %35 = arith.truncf %34 : vector<16x512xf32> to vector<16x512xbf16>
    %c0_29 = arith.constant 0 : index
    %c0_30 = arith.constant 0 : index
    %36 = vector.load %arg12[%c0_29, %c0_30] : memref<512x512xbf16, #tpu.memory_space<vmem>>, vector<512x512xbf16>
    %cst_31 = arith.constant dense<0.000000e+00> : vector<16x512xf32>
    %37 = tpu.matmul %35, %36, %cst_31 {dimension_numbers = #tpu.dot_dimension_numbers<[1], [0], [0], [1], [0, 0, 1, 1], [], []>} : vector<16x512xbf16>, vector<512x512xbf16>, vector<16x512xf32> -> vector<16x512xf32>
    %c0_32 = arith.constant 0 : index
    %c0_33 = arith.constant 0 : index
    %38 = vector.load %arg13[%c0_32, %c0_33] : memref<1x512xf32, #tpu.memory_space<vmem>>, vector<1x512xf32>
    %39 = vector.broadcast %38 : vector<1x512xf32> to vector<16x512xf32>
    %40 = arith.addf %37, %39 : vector<16x512xf32>
    %cst_34 = arith.constant 0.000000e+00 : f32
    %41 = vector.broadcast %cst_34 : f32 to vector<16x512xf32>
    %42 = arith.maximumf %40, %41 : vector<16x512xf32>
    %c0_35 = arith.constant 0 : index
    %c0_36 = arith.constant 0 : index
    %43 = vector.load %arg14[%c0_35, %c0_36] : memref<1x512xf32, #tpu.memory_space<vmem>>, vector<1x512xf32>
    %44 = vector.broadcast %43 : vector<1x512xf32> to vector<16x512xf32>
    %45 = arith.mulf %42, %44 : vector<16x512xf32>
    %cst_37 = arith.constant dense<0.000000e+00> : vector<16xf32>
    %46 = vector.multi_reduction <add>, %45, %cst_37 [1] : vector<16x512xf32> to vector<16xf32>
    %47 = vector.shape_cast %46 : vector<16xf32> to vector<16x1xf32>
    %48 = tpu.concatenate %24, %47 in 1 : vector<16x1xf32>, vector<16x1xf32> -> vector<16x2xf32>
    %c0_38 = arith.constant 0 : index
    %c0_39 = arith.constant 0 : index
    %49 = vector.load %arg15[%c0_38, %c0_39] : memref<1x2xf32, #tpu.memory_space<vmem>>, vector<1x2xf32>
    %50 = vector.broadcast %49 : vector<1x2xf32> to vector<16x2xf32>
    %51 = arith.addf %48, %50 : vector<16x2xf32>
    %c0_40 = arith.constant 0 : index
    %c0_41 = arith.constant 0 : index
    %52 = vector.load %arg16[%c0_40, %c0_41] : memref<16x2xf32, #tpu.memory_space<vmem>>, vector<16x2xf32>
    tpu.vector_store %arg16[%c0_40, %c0_41], %51 {strides = array<i32>} : memref<16x2xf32, #tpu.memory_space<vmem>>, vector<16x2xf32>,
    return
  }
  func.func @transform_0(%arg0: i32) -> (i32, i32) {
    %c0_i32 = arith.constant 0 : i32
    %c0_i32_0 = arith.constant 0 : i32
    return %arg0, %c0_i32 : i32, i32
  }
  func.func @transform_1(%arg0: i32) -> (i32, i32) {
    %c0_i32 = arith.constant 0 : i32
    %c0_i32_0 = arith.constant 0 : i32
    return %arg0, %c0_i32 : i32, i32
  }
  func.func @transform_2(%arg0: i32) -> (i32, i32) {
    %c0_i32 = arith.constant 0 : i32
    %c0_i32_0 = arith.constant 0 : i32
    %c0_i32_1 = arith.constant 0 : i32
    return %c0_i32, %c0_i32_0 : i32, i32
  }
  func.func @transform_3(%arg0: i32) -> (i32, i32) {
    %c0_i32 = arith.constant 0 : i32
    %c0_i32_0 = arith.constant 0 : i32
    %c0_i32_1 = arith.constant 0 : i32
    return %c0_i32, %c0_i32_0 : i32, i32
  }
  func.func @transform_4(%arg0: i32) -> (i32, i32) {
    %c0_i32 = arith.constant 0 : i32
    %c0_i32_0 = arith.constant 0 : i32
    %c0_i32_1 = arith.constant 0 : i32
    return %c0_i32, %c0_i32_0 : i32, i32
  }
  func.func @transform_5(%arg0: i32) -> (i32, i32) {
    %c0_i32 = arith.constant 0 : i32
    %c0_i32_0 = arith.constant 0 : i32
    %c0_i32_1 = arith.constant 0 : i32
    return %c0_i32, %c0_i32_0 : i32, i32
  }
  func.func @transform_6(%arg0: i32) -> (i32, i32) {
    %c0_i32 = arith.constant 0 : i32
    %c0_i32_0 = arith.constant 0 : i32
    %c0_i32_1 = arith.constant 0 : i32
    return %c0_i32, %c0_i32_0 : i32, i32
  }
  func.func @transform_7(%arg0: i32) -> (i32, i32) {
    %c0_i32 = arith.constant 0 : i32
    %c0_i32_0 = arith.constant 0 : i32
    %c0_i32_1 = arith.constant 0 : i32
    return %c0_i32, %c0_i32_0 : i32, i32
  }
  func.func @transform_8(%arg0: i32) -> (i32, i32) {
    %c0_i32 = arith.constant 0 : i32
    %c0_i32_0 = arith.constant 0 : i32
    %c0_i32_1 = arith.constant 0 : i32
    return %c0_i32, %c0_i32_0 : i32, i32
  }
  func.func @transform_9(%arg0: i32) -> (i32, i32) {
    %c0_i32 = arith.constant 0 : i32
    %c0_i32_0 = arith.constant 0 : i32
    %c0_i32_1 = arith.constant 0 : i32
    return %c0_i32, %c0_i32_0 : i32, i32
  }
  func.func @transform_10(%arg0: i32) -> (i32, i32) {
    %c0_i32 = arith.constant 0 : i32
    %c0_i32_0 = arith.constant 0 : i32
    %c0_i32_1 = arith.constant 0 : i32
    return %c0_i32, %c0_i32_0 : i32, i32
  }
  func.func @transform_11(%arg0: i32) -> (i32, i32) {
    %c0_i32 = arith.constant 0 : i32
    %c0_i32_0 = arith.constant 0 : i32
    %c0_i32_1 = arith.constant 0 : i32
    return %c0_i32, %c0_i32_0 : i32, i32
  }
  func.func @transform_12(%arg0: i32) -> (i32, i32) {
    %c0_i32 = arith.constant 0 : i32
    %c0_i32_0 = arith.constant 0 : i32
    %c0_i32_1 = arith.constant 0 : i32
    return %c0_i32, %c0_i32_0 : i32, i32
  }
  func.func @transform_13(%arg0: i32) -> (i32, i32) {
    %c0_i32 = arith.constant 0 : i32
    %c0_i32_0 = arith.constant 0 : i32
    %c0_i32_1 = arith.constant 0 : i32
    return %c0_i32, %c0_i32_0 : i32, i32
  }
  func.func @transform_14(%arg0: i32) -> (i32, i32) {
    %c0_i32 = arith.constant 0 : i32
    %c0_i32_0 = arith.constant 0 : i32
    %c0_i32_1 = arith.constant 0 : i32
    return %c0_i32, %c0_i32_0 : i32, i32
  }
  func.func @transform_15(%arg0: i32) -> (i32, i32) {
    %c0_i32 = arith.constant 0 : i32
    %c0_i32_0 = arith.constant 0 : i32
    return %arg0, %c0_i32 : i32, i32
  }
}

</mosaic_0001>

<bundles_post_ra>
// kernel: critic_forward.1
= control target key start
LH: loop header
LB: loop body
LE: loop exit
PB: predicated region body
PF: predicated region fallthrough
CT: control target
= control target key end

     0   :  { %20 = vsyncpa [#allocation3], 0  ;;  %s4597_s0 = inlined_call_operand.vmem [shape: bf16[16,16], index: 0, kind: input, shape index: {}]   ;;  %s4598_s1 = inlined_call_operand.vmem [shape: bf16[16,8], index: 1, kind: input, shape index: {}]   ;;  %s4599_s2 = inlined_call_operand.vmem [shape: bf16[16,512], index: 2, kind: input, shape index: {}]   ;;  %s4600_s3 = inlined_call_operand.vmem [shape: bf16[8,512], index: 3, kind: input, shape index: {}]   ;;  %s4601_s4 = inlined_call_operand.vmem [shape: f32[1,512], index: 4, kind: input, shape index: {}]   ;;  %s4602_s5 = inlined_call_operand.hbm [shape: bf16[512,512], index: 5, kind: input, shape index: {}]   ;;  %s4603_s6 = inlined_call_operand.vmem [shape: f32[1,512], index: 6, kind: input, shape index: {}]   ;;  %s4604_s7 = inlined_call_operand.hbm [shape: f32[1,512], index: 7, kind: input, shape index: {}]   ;;  %s4605_s8 = inlined_call_operand.hbm [shape: bf16[16,512], index: 8, kind: input, shape index: {}]   ;;  %s4606_s9 = inlined_call_operand.hbm [shape: bf16[8,512], index: 9, kind: input, shape index: {}]   ;;  %s4607_s10 = inlined_call_operand.hbm [shape: f32[1,512], index: 10, kind: input, shape index: {}]   ;;  %s4608_s11 = inlined_call_operand.hbm [shape: bf16[512,512], index: 11, kind: input, shape index: {}]   ;;  %s4609_s12 = inlined_call_operand.hbm [shape: f32[1,512], index: 12, kind: input, shape index: {}]   ;;  %s4610_s13 = inlined_call_operand.vmem [shape: f32[1,512], index: 13, kind: input, shape index: {}]   ;;  %s4611_s14 = inlined_call_operand.hbm [shape: f32[1,2], index: 14, kind: input, shape index: {}]   ;;  %s4612_s15 = inlined_call_operand.vmem [shape: f32[16,2], index: 15, kind: output, shape index: {}]  }
   0x1   :  { %21 = vsyncpa [#allocation5], 0 }
   0x2   :  { %22 = vsyncpa [#allocation8], 0 }
   0x3   :  { %23 = vsyncpa [#allocation11], 0  ;;  %s55_s20 = sshll.u32 %s4604_s7, 4  ;;  %s56_s20 = int_to_ptr.hbm [resolvable:$true] %s55_s20 }
   0x4   :  { %24 = vsyncpa [#allocation14], 0  ;;  %s4227_s21 = smov [#allocation4]   ;;  %s79_s25 = sshll.u32 %s4606_s9, 4  ;;  %s80_s25 = int_to_ptr.hbm [resolvable:$true] %s79_s25 }
   0x5   :  { %s57_s22 = sshll.u32 %s4227_s21, 4  ;;  %s4228_s26 = smov [#allocation7]   ;;  %s58_s22 = int_to_ptr.vmem [resolvable:$true] %s57_s22 }
   0x6   :  { %60 = dma.hbm_to_vmem [thread:$0]  %s56_s20, 64, %s58_s22, [#allocation5]  }
   0x7   :  { %s81_s27 = sshll.u32 %s4228_s26, 4  ;;  %s100_s30 = sshll.u32 %s4608_s11, 4  ;;  %s82_s27 = int_to_ptr.vmem [resolvable:$true] %s81_s27  ;;  %s101_s30 = int_to_ptr.hbm [resolvable:$true] %s100_s30 }
   0x8   :  { %84 = dma.hbm_to_vmem [thread:$0]  %s80_s25, 256, %s82_s27, [#allocation8]  }
   0x9   :  { %s4229_s7 = smov [#allocation10]   ;;  %s39_s19 = sshll.u32 %s4602_s5, 4  ;;  %s40_s19 = int_to_ptr.hbm [resolvable:$true] %s39_s19 }
   0xa   :  { %s102_s16 = sshll.u32 %s4229_s7, 4  ;;  %s4230_s21 = smov 256   ;;  %s103_s16 = int_to_ptr.vmem [resolvable:$true] %s102_s16 }
   0xb   :  { %s4231_s9 = smov 16   ;;  %s4232_s20 = smov [#allocation2]  }
   0xc   :  { %108 = dma.hbm_to_vmem [thread:$0]  %s101_s30, 16384, %s103_s16, [#allocation11], %s4230_s21, %s4230_s21, %s4231_s9  }
   0xd   :  { %s41_s22 = sshll.u32 %s4232_s20, 4  ;;  %s65_s25 = sshll.u32 %s4605_s8, 4  ;;  %s42_s22 = int_to_ptr.vmem [resolvable:$true] %s41_s22  ;;  %s66_s25 = int_to_ptr.hbm [resolvable:$true] %s65_s25 }
   0xe   :  { %47 = dma.hbm_to_vmem [thread:$0]  %s40_s19, 16384, %s42_s22, [#allocation3], %s4230_s21, %s4230_s21, %s4231_s9  }
   0xf   :  { %s90_s27 = sshll.u32 %s4607_s10, 4  ;;  %s4233_s28 = smov [#allocation6]   ;;  %s91_s27 = int_to_ptr.hbm [resolvable:$true] %s90_s27 }
  0x10   :  { %s67_s29 = sshll.u32 %s4233_s28, 4  ;;  %s4234_s5 = smov [#allocation9]   ;;  %s68_s29 = int_to_ptr.vmem [resolvable:$true] %s67_s29 }
  0x11   :  { %73 = dma.hbm_to_vmem [thread:$0]  %s66_s25, 512, %s68_s29, [#allocation5], %s4230_s21, %s4230_s21, %s4231_s9  }
  0x12   :  { %s92_s30 = sshll.u32 %s4234_s5, 4  ;;  %s114_s17 = sshll.u32 %s4609_s12, 4  ;;  %s93_s30 = int_to_ptr.vmem [resolvable:$true] %s92_s30  ;;  %s115_s17 = int_to_ptr.hbm [resolvable:$true] %s114_s17 }
  0x13   :  { %95 = dma.hbm_to_vmem [thread:$0]  %s91_s27, 64, %s93_s30, [#allocation8]  }
  0x14   :  { %s127_s19 = sshll.u32 %s4611_s14, 4  ;;  %s4235_s20 = smov [#allocation12]   ;;  %s128_s19 = int_to_ptr.hbm [resolvable:$true] %s127_s19 }
  0x15   :  { %s116_s10 = sshll.u32 %s4235_s20, 4  ;;  %s4236_s22 = smov [#allocation13]   ;;  %s117_s10 = int_to_ptr.vmem [resolvable:$true] %s116_s10 }
  0x16   :  { %119 = dma.hbm_to_vmem [thread:$0]  %s115_s17, 64, %s117_s10, [#allocation11]  }
  0x17   :  { %s129_s21 = sshll.u32 %s4236_s22, 4  ;;  %s130_s21 = int_to_ptr.vmem [resolvable:$true] %s129_s21 }
  0x18   :  { %132 = dma.hbm_to_vmem [thread:$0]  %s128_s19, 16, %s130_s21, [#allocation14]  }
  0x19   :  { %4217 = dma.done.wait [#allocation3], 16384  }
  0x1a   :  { %4218 = vsyncadd [#allocation3], 4294950912 }
  0x1b   :  { %4219 = dma.done.wait [#allocation5], 576  }
  0x1c   :  { %4220 = vsyncadd [#allocation5], 4294966720 }
  0x1d   :  { %4221 = dma.done.wait [#allocation8], 320  }
  0x1e   :  { %4222 = vsyncadd [#allocation8], 4294966976 }
  0x1f   :  { %4223 = dma.done.wait [#allocation11], 16448  }
  0x20   :  { %4224 = vsyncadd [#allocation11], 4294950848 }
  0x21   :  { %4225 = dma.done.wait [#allocation14], 16  }
  0x22   :  { %4226 = vsyncadd [#allocation14], 4294967280  ;;  %v174_v0 = vld [vmem:[%s4600_s3] sm:$0xff]  ;;  %v175_v1 = vld [vmem:[%s4600_s3 + $0x8] sm:$0xff]  ;;  %vm195_vm0 = vcmask 1043456   ;;  %vm191_vm1 = vcmask 64512  }
  0x23   :  { %v183_v2 = vunpack.c.l.b16 %v174_v0  ;;  %v184_v3 = vunpack.c.h.b16 %v174_v0  ;;  %v185_v4 = vunpack.c.l.b16 %v175_v1  ;;  %v186_v5 = vunpack.c.h.b16 %v175_v1  ;;  %v2680_v6 = vld [vmem:[%s4599_s2] sm:$0xf]  ;;  %v3750_v7 = vld [vmem:[%s4599_s2 + $0xc] sm:$0xf0]  ;;  %v3748_v8 = vld [vmem:[%s4599_s2 + $0x4] sm:$0xf] }
  0x24   :  { %v2682_v9 = vld [vmem:[%s4599_s2 + $0x10] sm:$0xf0]  ;;  %v2688_v10 = vld [vmem:[%s4599_s2 + $0x8] sm:$0xf]  ;;  %v3747_v15 = vld [vmem:[%s4598_s1] sm:$0xff]  ;;  %v2681_v19 = vor.u32 %v3750_v7, %v2680_v6  ;;  %vm289_vm2 = vcmask 130048  }
  0x25   :  { %v187_v11 = vpack.c.b16 %v183_v2, %v183_v2  ;;  %v188_v12 = vpack.c.b16 %v184_v3, %v184_v3  ;;  %v189_v13 = vpack.c.b16 %v185_v4, %v185_v4  ;;  %v190_v14 = vpack.c.b16 %v186_v5, %v186_v5  ;;  %v3751_v16 = vld [vmem:[%s4599_s2 + $0x14] sm:$0xf0]  ;;  %v3749_v17 = vld [vmem:[%s4599_s2 + $0xc] sm:$0xf]  ;;  %v2690_v18 = vld [vmem:[%s4599_s2 + $0x18] sm:$0xf0] }
  0x26   :  { %v2685_v20 = vor.u32 %v3748_v8, %v2682_v9  ;;  %v2812_v21 = vld [vmem:[#allocation2 + $0xe0] sm:$0xf]  ;;  %v3782_v22 = vld [vmem:[#allocation2 + $0xec] sm:$0xf0]  ;;  %v2689_v29 = vor.u32 %v3751_v16, %v2688_v10  ;;  %v2693_v30 = vor.u32 %v3749_v17, %v2690_v18  ;;  %vm2645_vm3 = vcmask 7168  }
  0x27   :  { %v2940_v23 = vld [vmem:[#allocation2 + $0x1e0] sm:$0xf]  ;;  %v197_v24 = vsel %vm195_vm0, %v187_v11, 0  ;;  %v200_v25 = vsel %vm195_vm0, %v188_v12, 0  ;;  %v203_v26 = vsel %vm195_vm0, %v189_v13, 0  ;;  %v206_v27 = vsel %vm195_vm0, %v190_v14, 0 }
  0x28   :  { %v3814_v28 = vld [vmem:[#allocation2 + $0x1ec] sm:$0xf0]  ;;  %215 = vmatpush.bf16.msra.mxu0 %v197_v24  ;;  %229 = vmatpush.bf16.msra.mxu1 %v200_v25  ;;  %v3068_v31 = vld [vmem:[#allocation2 + $0x2e0] sm:$0xf]  ;;  %v2813_v33 = vor.u32 %v3782_v22, %v2812_v21  ;;  %vm2654_vm4 = vcmask 15360  }
  0x29   :  { %243 = vmatpush.bf16.msra.mxu2 %v203_v26  ;;  %257 = vmatpush.bf16.msra.mxu3 %v206_v27  ;;  %v3846_v32 = vld [vmem:[#allocation2 + $0x2ec] sm:$0xf0]  ;;  %v2941_v34 = vor.u32 %v3814_v28, %v2940_v23  ;;  %v2796_v35 = vld [vmem:[#allocation2 + $0xc0] sm:$0xf] }
  0x2a   :  { %v3196_v36 = vld [vmem:[#allocation2 + $0x3e0] sm:$0xf]  ;;  %v3878_v37 = vld [vmem:[#allocation2 + $0x3ec] sm:$0xf0]  ;;  %v3069_v41 = vor.u32 %v3846_v32, %v3068_v31 }
  0x2b   :  { %2670 = vmatmul.msk.bf16.vlgmr.msra.gmra.mxu0 %vm191_vm1, %v3747_v15  ;;  %2671 = vmatmul.msk.bf16.vlgmr.msra.gmra.mxu1 %vm191_vm1, %v3747_v15  ;;  %v3778_v38 = vld [vmem:[#allocation2 + $0xcc] sm:$0xf0]  ;;  %v2924_v39 = vld [vmem:[#allocation2 + $0x1c0] sm:$0xf]  ;;  %v3197_v42 = vor.u32 %v3878_v37, %v3196_v36 }
  0x2c   :  { %300 = vmatpush.bf16.msrb.mxu0 %v2681_v19  ;;  %314 = vmatpush.bf16.msrb.mxu1 %v2685_v20  ;;  %v3810_v40 = vld [vmem:[#allocation2 + $0x1cc] sm:$0xf0]  ;;  %v3052_v43 = vld [vmem:[#allocation2 + $0x2c0] sm:$0xf]  ;;  %v2797_v47 = vor.u32 %v3778_v38, %v2796_v35 }
  0x2d   :  { %2672 = vmatmul.msk.bf16.vlgmr.msra.gmra.mxu2 %vm191_vm1, %v3747_v15  ;;  %2673 = vmatmul.msk.bf16.vlgmr.msra.gmra.mxu3 %vm191_vm1, %v3747_v15  ;;  %v3842_v44 = vld [vmem:[#allocation2 + $0x2cc] sm:$0xf0]  ;;  %v3180_v45 = vld [vmem:[#allocation2 + $0x3c0] sm:$0xf]  ;;  %v2925_v48 = vor.u32 %v3810_v40, %v2924_v39 }
  0x2e   :  { %328 = vmatpush.bf16.msrb.mxu2 %v2689_v29  ;;  %342 = vmatpush.bf16.msrb.mxu3 %v2693_v30  ;;  %v3874_v46 = vld [vmem:[#allocation2 + $0x3cc] sm:$0xf0]  ;;  %v2780_v49 = vld [vmem:[#allocation2 + $0xa0] sm:$0xf]  ;;  %v3053_v53 = vor.u32 %v3842_v44, %v3052_v43 }
  0x2f   :  { %v3774_v50 = vld [vmem:[#allocation2 + $0xac] sm:$0xf0]  ;;  %v2908_v51 = vld [vmem:[#allocation2 + $0x1a0] sm:$0xf]  ;;  %v3181_v54 = vor.u32 %v3874_v46, %v3180_v45 }
  0x30   :  { %1157 = vmatpush.bf16.msra.mxu0 %v2813_v33  ;;  %1171 = vmatpush.bf16.msra.mxu1 %v2941_v34  ;;  %v3806_v52 = vld [vmem:[#allocation2 + $0x1ac] sm:$0xf0]  ;;  %v3036_v55 = vld [vmem:[#allocation2 + $0x2a0] sm:$0xf]  ;;  %v2781_v59 = vor.u32 %v3774_v50, %v2780_v49  ;;  %v2814_v49 = vld [vmem:[#allocation2 + $0xf0] sm:$0xf0] }
  0x31   :  { %v3838_v56 = vld [vmem:[#allocation2 + $0x2ac] sm:$0xf0]  ;;  %v3164_v57 = vld [vmem:[#allocation2 + $0x3a0] sm:$0xf]  ;;  %v2909_v60 = vor.u32 %v3806_v52, %v2908_v51  ;;  %v3812_v50 = vld [vmem:[#allocation2 + $0x1e4] sm:$0xf] }
  0x32   :  { %1185 = vmatpush.bf16.msra.mxu2 %v3069_v41  ;;  %1199 = vmatpush.bf16.msra.mxu3 %v3197_v42  ;;  %v3870_v58 = vld [vmem:[#allocation2 + $0x3ac] sm:$0xf0]  ;;  %v2764_v61 = vld [vmem:[#allocation2 + $0x80] sm:$0xf]  ;;  %v3037_v1 = vor.u32 %v3838_v56, %v3036_v55  ;;  %v2942_v51 = vld [vmem:[#allocation2 + $0x1f0] sm:$0xf0] }
  0x33   :  { %v3770_v62 = vld [vmem:[#allocation2 + $0x8c] sm:$0xf0]  ;;  %v2892_v63 = vld [vmem:[#allocation2 + $0x180] sm:$0xf]  ;;  %v3165_v2 = vor.u32 %v3870_v58, %v3164_v57 }
  0x34   :  { %1158 = vmatpush.bf16.msra.mxu0 %v2797_v47  ;;  %1172 = vmatpush.bf16.msra.mxu1 %v2925_v48  ;;  %v3802_v0 = vld [vmem:[#allocation2 + $0x18c] sm:$0xf0]  ;;  %v3746_v3 = vld [vmem:[%s4597_s0] sm:$0xff]  ;;  %v2765_v7 = vor.u32 %v3770_v62, %v2764_v61  ;;  %v2798_v61 = vld [vmem:[#allocation2 + $0xd0] sm:$0xf0] }
  0x35   :  { %v2748_v4 = vld [vmem:[#allocation2 + $0x60] sm:$0xf]  ;;  %v3834_v6 = vld [vmem:[#allocation2 + $0x28c] sm:$0xf0]  ;;  %v2893_v8 = vor.u32 %v3802_v0, %v2892_v63  ;;  %v3780_v47 = vld [vmem:[#allocation2 + $0xe4] sm:$0xf] }
  0x36   :  { %1186 = vmatpush.bf16.msra.mxu2 %v3053_v53  ;;  %1200 = vmatpush.bf16.msra.mxu3 %v3181_v54  ;;  %v3020_v5 = vld [vmem:[#allocation2 + $0x280] sm:$0xf]  ;;  %v3866_v10 = vld [vmem:[#allocation2 + $0x38c] sm:$0xf0]  ;;  %v2817_v52 = vor.u32 %v3780_v47, %v2814_v49  ;;  %v2945_v53 = vor.u32 %v3812_v50, %v2942_v51  ;;  %v3808_v62 = vld [vmem:[#allocation2 + $0x1c4] sm:$0xf] }
  0x37   :  { %v3148_v9 = vld [vmem:[#allocation2 + $0x380] sm:$0xf]  ;;  %v3766_v11 = vld [vmem:[#allocation2 + $0x6c] sm:$0xf0]  ;;  %v3021_v14 = vor.u32 %v3834_v6, %v3020_v5  ;;  %v2926_v0 = vld [vmem:[#allocation2 + $0x1d0] sm:$0xf0] }
  0x38   :  { %1159 = vmatpush.bf16.msra.mxu0 %v2781_v59  ;;  %1173 = vmatpush.bf16.msra.mxu1 %v2909_v60  ;;  %v2876_v12 = vld [vmem:[#allocation2 + $0x160] sm:$0xf]  ;;  %v3798_v13 = vld [vmem:[#allocation2 + $0x16c] sm:$0xf0]  ;;  %v3149_v15 = vor.u32 %v3866_v10, %v3148_v9  ;;  %v2749_v18 = vor.u32 %v3766_v11, %v2748_v4  ;;  %v3776_v60 = vld [vmem:[#allocation2 + $0xc4] sm:$0xf] }
  0x39   :  { %v2732_v16 = vld [vmem:[#allocation2 + $0x40] sm:$0xf]  ;;  %v2877_v19 = vor.u32 %v3798_v13, %v2876_v12  ;;  %v3830_v20 = vld [vmem:[#allocation2 + $0x26c] sm:$0xf0]  ;;  %v2801_v63 = vor.u32 %v3776_v60, %v2798_v61  ;;  %v3070_v9 = vld [vmem:[#allocation2 + $0x2f0] sm:$0xf0] }
  0x3a   :  { %1187 = vmatpush.bf16.msra.mxu2 %v3037_v1  ;;  %1201 = vmatpush.bf16.msra.mxu3 %v3165_v2  ;;  %v3004_v17 = vld [vmem:[#allocation2 + $0x260] sm:$0xf]  ;;  %v3862_v22 = vld [vmem:[#allocation2 + $0x36c] sm:$0xf0]  ;;  %v3876_v10 = vld [vmem:[#allocation2 + $0x3e4] sm:$0xf] }
  0x3b   :  { %v3132_v21 = vld [vmem:[#allocation2 + $0x360] sm:$0xf]  ;;  %2694 = vmatmul.msk.bf16.vlgmr.msrb.gmra.mxu0 %vm289_vm2, %v3746_v3  ;;  %2695 = vmatmul.msk.bf16.vlgmr.msrb.gmra.mxu1 %vm289_vm2, %v3746_v3  ;;  %v3762_v23 = vld [vmem:[#allocation2 + $0x4c] sm:$0xf0]  ;;  %v3005_v26 = vor.u32 %v3830_v20, %v3004_v17  ;;  %v3198_v11 = vld [vmem:[#allocation2 + $0x3f0] sm:$0xf0] }
  0x3c   :  { %1160 = vmatpush.bf16.msra.mxu0 %v2765_v7  ;;  %1174 = vmatpush.bf16.msra.mxu1 %v2893_v8  ;;  %v2860_v24 = vld [vmem:[#allocation2 + $0x140] sm:$0xf]  ;;  %v3794_v25 = vld [vmem:[#allocation2 + $0x14c] sm:$0xf0]  ;;  %v3133_v27 = vor.u32 %v3862_v22, %v3132_v21  ;;  %v2733_v28 = vor.u32 %v3762_v23, %v2732_v16  ;;  %v3844_v7 = vld [vmem:[#allocation2 + $0x2e4] sm:$0xf]  ;;  %v3201_v13 = vor.u32 %v3876_v10, %v3198_v11 }
  0x3d   :  { %2696 = vmatmul.msk.bf16.vlgmr.msrb.gmra.mxu2 %vm289_vm2, %v3746_v3  ;;  %2697 = vmatmul.msk.bf16.vlgmr.msrb.gmra.mxu3 %vm289_vm2, %v3746_v3  ;;  %v2861_v29 = vor.u32 %v3794_v25, %v2860_v24  ;;  %v2716_v30 = vld [vmem:[#allocation2 + $0x20] sm:$0xf]  ;;  %v3758_v31 = vld [vmem:[#allocation2 + $0x2c] sm:$0xf0]  ;;  %v2929_v3 = vor.u32 %v3808_v62, %v2926_v0  ;;  %v3073_v12 = vor.u32 %v3844_v7, %v3070_v9  ;;  %v3804_v16 = vld [vmem:[#allocation2 + $0x1a4] sm:$0xf] }
  0x3e   :  { %1188 = vmatpush.bf16.msra.mxu2 %v3021_v14  ;;  %1202 = vmatpush.bf16.msra.mxu3 %v3149_v15  ;;  %v2844_v32 = vld [vmem:[#allocation2 + $0x120] sm:$0xf]  ;;  %v3790_v33 = vld [vmem:[#allocation2 + $0x12c] sm:$0xf0]  ;;  %v2717_v34 = vor.u32 %v3758_v31, %v2716_v30  ;;  %v3772_v14 = vld [vmem:[#allocation2 + $0xa4] sm:$0xf] }
  0x3f   :  { %v2845_v35 = vor.u32 %v3790_v33, %v2844_v32  ;;  %v2988_v36 = vld [vmem:[#allocation2 + $0x240] sm:$0xf]  ;;  %v3826_v37 = vld [vmem:[#allocation2 + $0x24c] sm:$0xf0]  ;;  %v2782_v15 = vld [vmem:[#allocation2 + $0xb0] sm:$0xf0] }
  0x40   :  { %1161 = vmatpush.bf16.msra.mxu0 %v2749_v18  ;;  %1175 = vmatpush.bf16.msra.mxu1 %v2877_v19  ;;  %v3116_v38 = vld [vmem:[#allocation2 + $0x340] sm:$0xf]  ;;  %v2989_v39 = vor.u32 %v3826_v37, %v2988_v36  ;;  %v3858_v40 = vld [vmem:[#allocation2 + $0x34c] sm:$0xf0]  ;;  %v2785_v17 = vor.u32 %v3772_v14, %v2782_v15  ;;  %v2910_v18 = vld [vmem:[#allocation2 + $0x1b0] sm:$0xf0] }
  0x41   :  { %v2700_v41 = vld [vmem:[#allocation2] sm:$0xf]  ;;  %v3754_v42 = vld [vmem:[#allocation2 + $0xc] sm:$0xf0]  ;;  %v3117_v43 = vor.u32 %v3858_v40, %v3116_v38  ;;  %v2913_v19 = vor.u32 %v3804_v16, %v2910_v18  ;;  %v3840_v20 = vld [vmem:[#allocation2 + $0x2c4] sm:$0xf] }
  0x42   :  { %1189 = vmatpush.bf16.msra.mxu2 %v3005_v26  ;;  %1203 = vmatpush.bf16.msra.mxu3 %v3133_v27  ;;  %v2701_v44 = vor.u32 %v3754_v42, %v2700_v41  ;;  %v2828_v45 = vld [vmem:[#allocation2 + $0x100] sm:$0xf]  ;;  %v3786_v46 = vld [vmem:[#allocation2 + $0x10c] sm:$0xf0]  ;;  %v3054_v21 = vld [vmem:[#allocation2 + $0x2d0] sm:$0xf0] }
  0x43   :  { %v2829_v48 = vor.u32 %v3786_v46, %v2828_v45  ;;  %v2972_v54 = vld [vmem:[#allocation2 + $0x220] sm:$0xf]  ;;  %v3822_v55 = vld [vmem:[#allocation2 + $0x22c] sm:$0xf0]  ;;  %v3872_v22 = vld [vmem:[#allocation2 + $0x3c4] sm:$0xf]  ;;  %v3057_v23 = vor.u32 %v3840_v20, %v3054_v21 }
  0x44   :  { %1162 = vmatpush.bf16.msra.mxu0 %v2733_v28  ;;  %1176 = vmatpush.bf16.msra.mxu1 %v2861_v29  ;;  %v3100_v56 = vld [vmem:[#allocation2 + $0x320] sm:$0xf]  ;;  %v2973_v57 = vor.u32 %v3822_v55, %v2972_v54  ;;  %v3854_v58 = vld [vmem:[#allocation2 + $0x32c] sm:$0xf0]  ;;  %v3182_v24 = vld [vmem:[#allocation2 + $0x3d0] sm:$0xf0] }
  0x45   :  { %v3101_v59 = vor.u32 %v3854_v58, %v3100_v56  ;;  %v2956_v1 = vld [vmem:[#allocation2 + $0x200] sm:$0xf]  ;;  %v3818_v2 = vld [vmem:[#allocation2 + $0x20c] sm:$0xf0]  ;;  %v3185_v25 = vor.u32 %v3872_v22, %v3182_v24  ;;  %v3768_v26 = vld [vmem:[#allocation2 + $0x84] sm:$0xf] }
  0x46   :  { %1190 = vmatpush.bf16.msra.mxu2 %v2989_v39  ;;  %1204 = vmatpush.bf16.msra.mxu3 %v3117_v43  ;;  %v2957_v4 = vor.u32 %v3818_v2, %v2956_v1  ;;  %v3084_v5 = vld [vmem:[#allocation2 + $0x300] sm:$0xf]  ;;  %v3850_v6 = vld [vmem:[#allocation2 + $0x30c] sm:$0xf0]  ;;  %v2766_v27 = vld [vmem:[#allocation2 + $0x90] sm:$0xf0] }
  0x47   :  { %v3085_v8 = vor.u32 %v3850_v6, %v3084_v5  ;;  %v3800_v28 = vld [vmem:[#allocation2 + $0x184] sm:$0xf]  ;;  %v2769_v29 = vor.u32 %v3768_v26, %v2766_v27  ;;  %v2894_v30 = vld [vmem:[#allocation2 + $0x190] sm:$0xf0] }
  0x48   :  { %1163 = vmatpush.bf16.msra.mxu0 %v2717_v34  ;;  %1177 = vmatpush.bf16.msra.mxu1 %v2845_v35  ;;  %v2897_v31 = vor.u32 %v3800_v28, %v2894_v30  ;;  %v3836_v32 = vld [vmem:[#allocation2 + $0x2a4] sm:$0xf]  ;;  %v3038_v33 = vld [vmem:[#allocation2 + $0x2b0] sm:$0xf0] }
  0x49   :  { %v3868_v34 = vld [vmem:[#allocation2 + $0x3a4] sm:$0xf]  ;;  %v3041_v35 = vor.u32 %v3836_v32, %v3038_v33  ;;  %v3166_v36 = vld [vmem:[#allocation2 + $0x3b0] sm:$0xf0] }
  0x4a   :  { %1191 = vmatpush.bf16.msra.mxu2 %v2973_v57  ;;  %1205 = vmatpush.bf16.msra.mxu3 %v3101_v59  ;;  %v3169_v37 = vor.u32 %v3868_v34, %v3166_v36  ;;  %v3764_v38 = vld [vmem:[#allocation2 + $0x64] sm:$0xf]  ;;  %v2750_v39 = vld [vmem:[#allocation2 + $0x70] sm:$0xf0] }
  0x4b   :  { %v2753_v40 = vor.u32 %v3764_v38, %v2750_v39  ;;  %v3796_v41 = vld [vmem:[#allocation2 + $0x164] sm:$0xf]  ;;  %v2878_v42 = vld [vmem:[#allocation2 + $0x170] sm:$0xf0]  ;;  %v349_v38 = vld [vmem:[%s4601_s4] sm:$0xf] }
  0x4c   :  { %1164 = vmatpush.bf16.msra.mxu0 %v2701_v44  ;;  %1178 = vmatpush.bf16.msra.mxu1 %v2829_v48  ;;  %v2881_v43 = vor.u32 %v3796_v41, %v2878_v42  ;;  %v3832_v44 = vld [vmem:[#allocation2 + $0x284] sm:$0xf]  ;;  %v3022_v45 = vld [vmem:[#allocation2 + $0x290] sm:$0xf0]  ;;  %v352_v42 = vperm.slane %v349_v38, 1 }
  0x4d   :  { %v3864_v46 = vld [vmem:[#allocation2 + $0x384] sm:$0xf]  ;;  %v3025_v47 = vor.u32 %v3832_v44, %v3022_v45  ;;  %v3150_v48 = vld [vmem:[#allocation2 + $0x390] sm:$0xf0] }
  0x4e   :  { %1192 = vmatpush.bf16.msra.mxu2 %v2957_v4  ;;  %1206 = vmatpush.bf16.msra.mxu3 %v3085_v8  ;;  %v3153_v49 = vor.u32 %v3864_v46, %v3150_v48  ;;  %v3760_v50 = vld [vmem:[#allocation2 + $0x44] sm:$0xf]  ;;  %v2734_v51 = vld [vmem:[#allocation2 + $0x50] sm:$0xf0] }
  0x4f   :  { %v2862_v54 = vld [vmem:[#allocation2 + $0x150] sm:$0xf0]  ;;  %v3828_v56 = vld [vmem:[#allocation2 + $0x264] sm:$0xf] }
  0x50   :  { %1213 = vmatpush.bf16.msrb.mxu0 %v2817_v52  ;;  %1227 = vmatpush.bf16.msrb.mxu1 %v2945_v53  ;;  %v3792_v52 = vld [vmem:[#allocation2 + $0x144] sm:$0xf]  ;;  %v2737_v53 = vor.u32 %v3760_v50, %v2734_v51  ;;  %v3006_v57 = vld [vmem:[#allocation2 + $0x270] sm:$0xf0]  ;;  %v2820_v51 = vld [vmem:[#allocation2 + $0xe8] sm:$0xf] }
  0x51   :  { %v2865_v55 = vor.u32 %v3792_v52, %v2862_v54  ;;  %v3009_v58 = vor.u32 %v3828_v56, %v3006_v57  ;;  %v3860_v59 = vld [vmem:[#allocation2 + $0x364] sm:$0xf]  ;;  %v3134_v60 = vld [vmem:[#allocation2 + $0x370] sm:$0xf0]  ;;  %v3783_v54 = vld [vmem:[#allocation2 + $0xf4] sm:$0xf0] }
  0x52   :  { %1241 = vmatpush.bf16.msrb.mxu2 %v3073_v12  ;;  %1255 = vmatpush.bf16.msrb.mxu3 %v3201_v13  ;;  %v3137_v61 = vor.u32 %v3860_v59, %v3134_v60  ;;  %v3756_v62 = vld [vmem:[#allocation2 + $0x24] sm:$0xf]  ;;  %v2846_v2 = vld [vmem:[#allocation2 + $0x130] sm:$0xf0]  ;;  %v3815_v56 = vld [vmem:[#allocation2 + $0x1f4] sm:$0xf0] }
  0x53   :  { %v3788_v0 = vld [vmem:[#allocation2 + $0x124] sm:$0xf]  ;;  %v2990_v5 = vld [vmem:[#allocation2 + $0x250] sm:$0xf0]  ;;  %v354_v60 = vperm.slane %v349_v38, 3 }
  0x54   :  { %1214 = vmatpush.bf16.msrb.mxu0 %v2801_v63  ;;  %1228 = vmatpush.bf16.msrb.mxu1 %v2929_v3  ;;  %v2718_v63 = vld [vmem:[#allocation2 + $0x30] sm:$0xf0]  ;;  %v2849_v3 = vor.u32 %v3788_v0, %v2846_v2  ;;  %v3824_v4 = vld [vmem:[#allocation2 + $0x244] sm:$0xf] }
  0x55   :  { %v2721_v1 = vor.u32 %v3756_v62, %v2718_v63  ;;  %v3856_v6 = vld [vmem:[#allocation2 + $0x344] sm:$0xf]  ;;  %v2993_v7 = vor.u32 %v3824_v4, %v2990_v5  ;;  %v3118_v8 = vld [vmem:[#allocation2 + $0x350] sm:$0xf0]  ;;  %v3779_v4 = vld [vmem:[#allocation2 + $0xd4] sm:$0xf0] }
  0x56   :  { %1242 = vmatpush.bf16.msrb.mxu2 %v3057_v23  ;;  %1256 = vmatpush.bf16.msrb.mxu3 %v3185_v25  ;;  %v3121_v9 = vor.u32 %v3856_v6, %v3118_v8  ;;  %v3752_v10 = vld [vmem:[#allocation2 + $0x4] sm:$0xf]  ;;  %v2702_v11 = vld [vmem:[#allocation2 + $0x10] sm:$0xf0] }
  0x57   :  { %v3784_v12 = vld [vmem:[#allocation2 + $0x104] sm:$0xf]  ;;  %v2705_v13 = vor.u32 %v3752_v10, %v2702_v11  ;;  %v2830_v14 = vld [vmem:[#allocation2 + $0x110] sm:$0xf0]  ;;  %v3811_v10 = vld [vmem:[#allocation2 + $0x1d4] sm:$0xf0] }
  0x58   :  { %1215 = vmatpush.bf16.msrb.mxu0 %v2785_v17  ;;  %1229 = vmatpush.bf16.msrb.mxu1 %v2913_v19  ;;  %v2833_v17 = vor.u32 %v3784_v12, %v2830_v14  ;;  %v3820_v18 = vld [vmem:[#allocation2 + $0x224] sm:$0xf]  ;;  %v2974_v19 = vld [vmem:[#allocation2 + $0x230] sm:$0xf0] }
  0x59   :  { %v3852_v20 = vld [vmem:[#allocation2 + $0x324] sm:$0xf]  ;;  %v3102_v21 = vld [vmem:[#allocation2 + $0x330] sm:$0xf0]  ;;  %v2977_v22 = vor.u32 %v3820_v18, %v2974_v19  ;;  %v3204_v18 = vld [vmem:[#allocation2 + $0x3e8] sm:$0xf] }
  0x5a   :  { %1243 = vmatpush.bf16.msrb.mxu2 %v3041_v35  ;;  %1257 = vmatpush.bf16.msrb.mxu3 %v3169_v37  ;;  %v3105_v23 = vor.u32 %v3852_v20, %v3102_v21  ;;  %v3816_v24 = vld [vmem:[#allocation2 + $0x204] sm:$0xf]  ;;  %v2958_v25 = vld [vmem:[#allocation2 + $0x210] sm:$0xf0] }
  0x5b   :  { %v2961_v26 = vor.u32 %v3816_v24, %v2958_v25  ;;  %v3848_v27 = vld [vmem:[#allocation2 + $0x304] sm:$0xf]  ;;  %v3086_v28 = vld [vmem:[#allocation2 + $0x310] sm:$0xf0]  ;;  %v3775_v24 = vld [vmem:[#allocation2 + $0xb4] sm:$0xf0] }
  0x5c   :  { %1216 = vmatpush.bf16.msrb.mxu0 %v2769_v29  ;;  %1230 = vmatpush.bf16.msrb.mxu1 %v2897_v31  ;;  %v3089_v29 = vor.u32 %v3848_v27, %v3086_v28  ;;  %v2916_v25 = vld [vmem:[#allocation2 + $0x1a8] sm:$0xf] }
  0x5e   :  { %1244 = vmatpush.bf16.msrb.mxu2 %v3025_v47  ;;  %1258 = vmatpush.bf16.msrb.mxu3 %v3153_v49 }
  0x60   :  { %1217 = vmatpush.bf16.msrb.mxu0 %v2753_v40  ;;  %1231 = vmatpush.bf16.msrb.mxu1 %v2881_v43  ;;  %v351_v40 = vperm.slane %v349_v38, 0 }
  0x62   :  { %1245 = vmatpush.bf16.msrb.mxu2 %v3009_v58  ;;  %1259 = vmatpush.bf16.msrb.mxu3 %v3137_v61  ;;  %v353_v58 = vperm.slane %v349_v38, 2 }
  0x64   :  { %1218 = vmatpush.bf16.msrb.mxu0 %v2737_v53  ;;  %1232 = vmatpush.bf16.msrb.mxu1 %v2865_v55  ;;  %v2948_v55 = vld [vmem:[#allocation2 + $0x1e8] sm:$0xf] }
  0x65   :  { %v2949_v2 = vor.u32 %v3815_v56, %v2948_v55  ;;  %v2884_v55 = vld [vmem:[#allocation2 + $0x168] sm:$0xf]  ;;  %v3799_v56 = vld [vmem:[#allocation2 + $0x174] sm:$0xf0] }
  0x66   :  { %1246 = vmatpush.bf16.msrb.mxu2 %v2993_v7  ;;  %1260 = vmatpush.bf16.msrb.mxu3 %v3121_v9  ;;  %v2932_v9 = vld [vmem:[#allocation2 + $0x1c8] sm:$0xf] }
  0x67   :  { %v2933_v21 = vor.u32 %v3811_v10, %v2932_v9  ;;  %v3012_v9 = vld [vmem:[#allocation2 + $0x268] sm:$0xf]  ;;  %v3831_v10 = vld [vmem:[#allocation2 + $0x274] sm:$0xf0] }
  0x68   :  { %1219 = vmatpush.bf16.msrb.mxu0 %v2721_v1  ;;  %1233 = vmatpush.bf16.msrb.mxu1 %v2849_v3  ;;  %v2821_v1 = vor.u32 %v3783_v54, %v2820_v51  ;;  %v2804_v3 = vld [vmem:[#allocation2 + $0xc8] sm:$0xf]  ;;  %v3767_v54 = vld [vmem:[#allocation2 + $0x74] sm:$0xf0] }
  0x69   :  { %v3172_v51 = vld [vmem:[#allocation2 + $0x3a8] sm:$0xf] }
  0x6a   :  { %1247 = vmatpush.bf16.msrb.mxu2 %v2977_v22  ;;  %1261 = vmatpush.bf16.msrb.mxu3 %v3105_v23  ;;  %v3879_v22 = vld [vmem:[#allocation2 + $0x3f4] sm:$0xf0]  ;;  %v2788_v23 = vld [vmem:[#allocation2 + $0xa8] sm:$0xf] }
  0x6c   :  { %1220 = vmatpush.bf16.msrb.mxu0 %v2705_v13  ;;  %1234 = vmatpush.bf16.msrb.mxu1 %v2833_v17  ;;  %v3847_v17 = vld [vmem:[#allocation2 + $0x2f4] sm:$0xf0] }
  0x6e   :  { %1248 = vmatpush.bf16.msrb.mxu2 %v2961_v26  ;;  %1262 = vmatpush.bf16.msrb.mxu3 %v3089_v29  ;;  %v3807_v26 = vld [vmem:[#allocation2 + $0x1b4] sm:$0xf0] }
  0x6f   :  { %v2917_v38 = vor.u32 %v3807_v26, %v2916_v25 }
  0xa8   :  { %v217_v15 = vpop.f32.mrf.mxu0  ;;  %v231_v16 = vpop.f32.mrf.mxu1 }
  0xb0   :  { %v245_v30 = vpop.f32.mrf.mxu2  ;;  %v259_v31 = vpop.f32.mrf.mxu3 }
  0xb1   :  { %v219_v32 = vpop.f32.mrf.mxu0  ;;  %v233_v33 = vpop.f32.mrf.mxu1 }
  0xb8   :  { %v247_v34 = vpop.f32.mrf.mxu2  ;;  %v261_v35 = vpop.f32.mrf.mxu3 }
  0xb9   :  { %v302_v36 = vpop.f32.mrf.mxu0  ;;  %v316_v37 = vpop.f32.mrf.mxu1 }
  0xba   :  { %v303_v39 = vadd.f32 %v302_v36, %v217_v15  ;;  %v317_v41 = vadd.f32 %v316_v37, %v231_v16  ;;  %v2805_v15 = vor.u32 %v3779_v4, %v2804_v3  ;;  %v3076_v16 = vld [vmem:[#allocation2 + $0x2e8] sm:$0xf]  ;;  %v3795_v4 = vld [vmem:[#allocation2 + $0x154] sm:$0xf0] }
  0xbb   :  { %v2868_v3 = vld [vmem:[#allocation2 + $0x148] sm:$0xf] }
  0xbc   :  { %v359_v47 = vadd.f32 %v351_v40, %v303_v39  ;;  %v360_v48 = vadd.f32 %v352_v42, %v317_v41  ;;  %v3188_v39 = vld [vmem:[#allocation2 + $0x3c8] sm:$0xf] }
  0xbd   :  { %v2772_v41 = vld [vmem:[#allocation2 + $0x88] sm:$0xf] }
  0xbe   :  { %v367_v61 = vmax.f32 %v359_v47, 0.0  ;;  %v368_v62 = vmax.f32 %v360_v48, 0.0  ;;  %v3044_v47 = vld [vmem:[#allocation2 + $0x2a8] sm:$0xf] }
  0xc0   :  { %v330_v43 = vpop.f32.mrf.mxu2  ;;  %v344_v44 = vpop.f32.mrf.mxu3 }
  0xc1   :  { %v304_v45 = vpop.f32.mrf.mxu0  ;;  %v318_v46 = vpop.f32.mrf.mxu1  ;;  %v331_v57 = vadd.f32 %v330_v43, %v245_v30  ;;  %v345_v59 = vadd.f32 %v344_v44, %v259_v31  ;;  %v3077_v31 = vor.u32 %v3847_v17, %v3076_v16  ;;  %v2900_v43 = vld [vmem:[#allocation2 + $0x188] sm:$0xf]  ;;  %v3803_v44 = vld [vmem:[#allocation2 + $0x194] sm:$0xf0] }
  0xc2   :  { %v305_v49 = vadd.f32 %v304_v45, %v219_v32  ;;  %v319_v50 = vadd.f32 %v318_v46, %v233_v33  ;;  %v3205_v32 = vor.u32 %v3879_v22, %v3204_v18  ;;  %v2789_v33 = vor.u32 %v3775_v24, %v2788_v23  ;;  %v3759_v16 = vld [vmem:[#allocation2 + $0x34] sm:$0xf0]  ;;  %v2852_v17 = vld [vmem:[#allocation2 + $0x128] sm:$0xf] }
  0xc3   :  { %v361_v11 = vadd.f32 %v353_v58, %v331_v57  ;;  %v362_v12 = vadd.f32 %v354_v60, %v345_v59  ;;  %v3028_v59 = vld [vmem:[#allocation2 + $0x288] sm:$0xf]  ;;  %v3791_v18 = vld [vmem:[#allocation2 + $0x134] sm:$0xf0] }
  0xc4   :  { %v363_v52 = vadd.f32 %v351_v40, %v305_v49  ;;  %v364_v53 = vadd.f32 %v352_v42, %v319_v50  ;;  %v3875_v40 = vld [vmem:[#allocation2 + $0x3d4] sm:$0xf0]  ;;  %v2901_v49 = vor.u32 %v3803_v44, %v2900_v43  ;;  %v3124_v23 = vld [vmem:[#allocation2 + $0x348] sm:$0xf]  ;;  %v2853_v26 = vor.u32 %v3791_v18, %v2852_v17  ;;  %v3801_v17 = vld [vmem:[#allocation2 + $0x18c] sm:$0xf] }
  0xc5   :  { %v369_v27 = vmax.f32 %v361_v11, 0.0  ;;  %v370_v28 = vmax.f32 %v362_v12, 0.0  ;;  %v3771_v42 = vld [vmem:[#allocation2 + $0x94] sm:$0xf0]  ;;  %v3189_v46 = vor.u32 %v3875_v40, %v3188_v39  ;;  %v3140_v11 = vld [vmem:[#allocation2 + $0x368] sm:$0xf] }
  0xc6   :  { %v371_v63 = vmax.f32 %v363_v52, 0.0  ;;  %v372_v0 = vmax.f32 %v364_v53, 0.0  ;;  %v2773_v48 = vor.u32 %v3771_v42, %v2772_v41  ;;  %v3839_v50 = vld [vmem:[#allocation2 + $0x2b4] sm:$0xf0]  ;;  %v2756_v53 = vld [vmem:[#allocation2 + $0x68] sm:$0xf] }
  0xc7   :  { %v3871_v52 = vld [vmem:[#allocation2 + $0x3b4] sm:$0xf0]  ;;  %v3045_v57 = vor.u32 %v3839_v50, %v3044_v47  ;;  %v2980_v39 = vld [vmem:[#allocation2 + $0x228] sm:$0xf]  ;;  %v3777_v47 = vld [vmem:[#allocation2 + $0xcc] sm:$0xf] }
  0xc8   :  { %v4392_v5 = vpack.c.bf16 %v371_v63, %v367_v61  ;;  %v4394_v6 = vpack.c.bf16 %v372_v0, %v368_v62  ;;  %v332_v7 = vpop.f32.mrf.mxu2  ;;  %v346_v8 = vpop.f32.mrf.mxu3  ;;  %v3156_v61 = vld [vmem:[#allocation2 + $0x388] sm:$0xf]  ;;  %v3867_v62 = vld [vmem:[#allocation2 + $0x394] sm:$0xf0]  ;;  %v2757_v63 = vor.u32 %v3767_v54, %v2756_v53  ;;  %v2885_v0 = vor.u32 %v3799_v56, %v2884_v55  ;;  %v2902_v18 = vld [vmem:[#allocation2 + $0x198] sm:$0xf0] }
  0xc9   :  { %v333_v13 = vadd.f32 %v332_v7, %v247_v34  ;;  %v347_v14 = vadd.f32 %v346_v8, %v261_v35  ;;  %v3060_v34 = vld [vmem:[#allocation2 + $0x2c8] sm:$0xf]  ;;  %v3843_v35 = vld [vmem:[#allocation2 + $0x2d4] sm:$0xf0]  ;;  %v3157_v8 = vor.u32 %v3867_v62, %v3156_v61 }
  0xca   :  { %1165 = vmatmul.bf16.vlgmr.msra.gmra.mxu0 %v4392_v5  ;;  %1179 = vmatmul.bf16.vlgmr.msra.gmra.mxu1 %v4394_v6  ;;  %v3061_v45 = vor.u32 %v3843_v35, %v3060_v34  ;;  %v3863_v12 = vld [vmem:[#allocation2 + $0x374] sm:$0xf0]  ;;  %v3813_v35 = vld [vmem:[#allocation2 + $0x1ec] sm:$0xf]  ;;  %v3108_v41 = vld [vmem:[#allocation2 + $0x328] sm:$0xf] }
  0xcb   :  { %v365_v19 = vadd.f32 %v353_v58, %v333_v13  ;;  %v366_v20 = vadd.f32 %v354_v60, %v347_v14  ;;  %1269 = vmatpush.bf16.msra.mxu0 %v2821_v1  ;;  %1283 = vmatpush.bf16.msra.mxu1 %v2949_v2  ;;  %v3173_v58 = vor.u32 %v3871_v52, %v3172_v51  ;;  %v3835_v60 = vld [vmem:[#allocation2 + $0x294] sm:$0xf0]  ;;  %v2740_v1 = vld [vmem:[#allocation2 + $0x48] sm:$0xf]  ;;  %v2934_v52 = vld [vmem:[#allocation2 + $0x1d8] sm:$0xf0] }
  0xcc   :  { %v3763_v2 = vld [vmem:[#allocation2 + $0x54] sm:$0xf0]  ;;  %v3029_v7 = vor.u32 %v3835_v60, %v3028_v59  ;;  %v2869_v14 = vor.u32 %v3795_v4, %v2868_v3  ;;  %v2964_v53 = vld [vmem:[#allocation2 + $0x208] sm:$0xf]  ;;  %v3877_v59 = vld [vmem:[#allocation2 + $0x3ec] sm:$0xf] }
  0xcd   :  { %v373_v29 = vmax.f32 %v365_v19, 0.0  ;;  %v374_v30 = vmax.f32 %v366_v20, 0.0  ;;  %v2741_v13 = vor.u32 %v3763_v2, %v2740_v1  ;;  %v3013_v19 = vor.u32 %v3831_v10, %v3012_v9  ;;  %v3827_v22 = vld [vmem:[#allocation2 + $0x254] sm:$0xf0]  ;;  %v3092_v55 = vld [vmem:[#allocation2 + $0x308] sm:$0xf] }
  0xce   :  { %v3141_v20 = vor.u32 %v3863_v12, %v3140_v11  ;;  %v3859_v24 = vld [vmem:[#allocation2 + $0x354] sm:$0xf0]  ;;  %v3206_v60 = vld [vmem:[#allocation2 + $0x3f8] sm:$0xf0]  ;;  %v3805_v3 = vld [vmem:[#allocation2 + $0x1ac] sm:$0xf] }
  0xcf   :  { %v4398_v36 = vpack.c.bf16 %v373_v29, %v369_v27  ;;  %v4400_v37 = vpack.c.bf16 %v374_v30, %v370_v28  ;;  %1270 = vmatpush.bf16.msra.mxu0 %v2805_v15  ;;  %1284 = vmatpush.bf16.msra.mxu1 %v2933_v21  ;;  %v2724_v15 = vld [vmem:[#allocation2 + $0x28] sm:$0xf]  ;;  %v3755_v28 = vld [vmem:[#allocation2 + $0x14] sm:$0xf0]  ;;  %v3125_v34 = vor.u32 %v3859_v24, %v3124_v23  ;;  %v2790_v2 = vld [vmem:[#allocation2 + $0xb8] sm:$0xf0] }
  0xd0   :  { %v2996_v21 = vld [vmem:[#allocation2 + $0x248] sm:$0xf]  ;;  %v2725_v25 = vor.u32 %v3759_v16, %v2724_v15  ;;  %v3787_v30 = vld [vmem:[#allocation2 + $0x114] sm:$0xf0]  ;;  %v2918_v4 = vld [vmem:[#allocation2 + $0x1b8] sm:$0xf0] }
  0xd1   :  { %1193 = vmatmul.bf16.vlgmr.msra.gmra.mxu2 %v4398_v36  ;;  %1207 = vmatmul.bf16.vlgmr.msra.gmra.mxu3 %v4400_v37  ;;  %v2708_v27 = vld [vmem:[#allocation2 + $0x8] sm:$0xf]  ;;  %v3823_v40 = vld [vmem:[#allocation2 + $0x234] sm:$0xf0]  ;;  %v3841_v9 = vld [vmem:[#allocation2 + $0x2cc] sm:$0xf] }
  0xd2   :  { %1297 = vmatpush.bf16.msra.mxu2 %v3077_v31  ;;  %1311 = vmatpush.bf16.msra.mxu3 %v3205_v32  ;;  %v2836_v29 = vld [vmem:[#allocation2 + $0x108] sm:$0xf]  ;;  %v3781_v31 = vld [vmem:[#allocation2 + $0xec] sm:$0xf]  ;;  %v2822_v32 = vld [vmem:[#allocation2 + $0xf8] sm:$0xf0]  ;;  %v2709_v43 = vor.u32 %v3755_v28, %v2708_v27  ;;  %v2981_v50 = vor.u32 %v3823_v40, %v2980_v39 }
  0xd3   :  { %1271 = vmatpush.bf16.msra.mxu0 %v2789_v33  ;;  %1285 = vmatpush.bf16.msra.mxu1 %v2917_v38  ;;  %v2997_v33 = vor.u32 %v3827_v22, %v2996_v21  ;;  %v2950_v38 = vld [vmem:[#allocation2 + $0x1f8] sm:$0xf0]  ;;  %v3855_v42 = vld [vmem:[#allocation2 + $0x334] sm:$0xf0]  ;;  %v2837_v44 = vor.u32 %v3787_v30, %v2836_v29  ;;  %v3873_v11 = vld [vmem:[#allocation2 + $0x3cc] sm:$0xf] }
  0xd4   :  { %v3109_v51 = vor.u32 %v3855_v42, %v3108_v41  ;;  %v3819_v54 = vld [vmem:[#allocation2 + $0x214] sm:$0xf0]  ;;  %v3062_v10 = vld [vmem:[#allocation2 + $0x2d8] sm:$0xf0]  ;;  %v3769_v15 = vld [vmem:[#allocation2 + $0x8c] sm:$0xf] }
  0xd5   :  { %v3851_v56 = vld [vmem:[#allocation2 + $0x314] sm:$0xf0]  ;;  %v3190_v12 = vld [vmem:[#allocation2 + $0x3d8] sm:$0xf0]  ;;  %v3837_v21 = vld [vmem:[#allocation2 + $0x2ac] sm:$0xf] }
  0xd6   :  { %1298 = vmatpush.bf16.msra.mxu2 %v3061_v45  ;;  %1312 = vmatpush.bf16.msra.mxu3 %v3189_v46  ;;  %v2825_v45 = vor.u32 %v3781_v31, %v2822_v32  ;;  %v2953_v46 = vor.u32 %v3813_v35, %v2950_v38  ;;  %v3093_v1 = vor.u32 %v3851_v56, %v3092_v55  ;;  %v2774_v16 = vld [vmem:[#allocation2 + $0x98] sm:$0xf0]  ;;  %v3869_v23 = vld [vmem:[#allocation2 + $0x3ac] sm:$0xf] }
  0xd7   :  { %1272 = vmatpush.bf16.msra.mxu0 %v2773_v48  ;;  %1286 = vmatpush.bf16.msra.mxu1 %v2901_v49  ;;  %v2806_v48 = vld [vmem:[#allocation2 + $0xd8] sm:$0xf0]  ;;  %v3809_v49 = vld [vmem:[#allocation2 + $0x1cc] sm:$0xf] }
  0xd8   :  { %v2809_v61 = vor.u32 %v3777_v47, %v2806_v48  ;;  %v2937_v62 = vor.u32 %v3809_v49, %v2934_v52  ;;  %v3046_v22 = vld [vmem:[#allocation2 + $0x2b8] sm:$0xf0]  ;;  %v3765_v27 = vld [vmem:[#allocation2 + $0x6c] sm:$0xf] }
  0xd9   :  { %v3174_v24 = vld [vmem:[#allocation2 + $0x3b8] sm:$0xf0]  ;;  %v3797_v29 = vld [vmem:[#allocation2 + $0x16c] sm:$0xf]  ;;  %v3049_v31 = vor.u32 %v3837_v21, %v3046_v22 }
  0xda   :  { %1299 = vmatpush.bf16.msra.mxu2 %v3045_v57  ;;  %1313 = vmatpush.bf16.msra.mxu3 %v3173_v58  ;;  %v3845_v57 = vld [vmem:[#allocation2 + $0x2ec] sm:$0xf]  ;;  %v3078_v58 = vld [vmem:[#allocation2 + $0x2f8] sm:$0xf0]  ;;  %v3177_v32 = vor.u32 %v3869_v23, %v3174_v24  ;;  %v3216_v23 = vld [vmem:[#allocation6] sm:$0xf] }
  0xdb   :  { %1221 = vmatmul.bf16.vlgmr.msrb.gmra.mxu0 %v4392_v5  ;;  %1235 = vmatmul.bf16.vlgmr.msrb.gmra.mxu1 %v4394_v6  ;;  %v2758_v28 = vld [vmem:[#allocation2 + $0x78] sm:$0xf0]  ;;  %v3865_v35 = vld [vmem:[#allocation2 + $0x38c] sm:$0xf]  ;;  %v3882_v24 = vld [vmem:[#allocation6 + $0xc] sm:$0xf0] }
  0xdc   :  { %1273 = vmatpush.bf16.msra.mxu0 %v2757_v63  ;;  %1287 = vmatpush.bf16.msra.mxu1 %v2885_v0  ;;  %v3773_v63 = vld [vmem:[#allocation2 + $0xac] sm:$0xf]  ;;  %v2965_v0 = vor.u32 %v3819_v54, %v2964_v53  ;;  %v2886_v30 = vld [vmem:[#allocation2 + $0x178] sm:$0xf0]  ;;  %v2761_v39 = vor.u32 %v3765_v27, %v2758_v28 }
  0xdd   :  { %v3158_v38 = vld [vmem:[#allocation2 + $0x398] sm:$0xf0]  ;;  %v2889_v40 = vor.u32 %v3797_v29, %v2886_v30  ;;  %v3761_v41 = vld [vmem:[#allocation2 + $0x4c] sm:$0xf] }
  0xde   :  { %1300 = vmatpush.bf16.msra.mxu2 %v3029_v7  ;;  %1314 = vmatpush.bf16.msra.mxu3 %v3157_v8  ;;  %v3081_v7 = vor.u32 %v3845_v57, %v3078_v58  ;;  %v3209_v8 = vor.u32 %v3877_v59, %v3206_v60  ;;  %v2742_v42 = vld [vmem:[#allocation2 + $0x58] sm:$0xf0]  ;;  %v3829_v47 = vld [vmem:[#allocation2 + $0x26c] sm:$0xf] }
  0xdf   :  { %v3014_v48 = vld [vmem:[#allocation2 + $0x278] sm:$0xf0]  ;;  %v3861_v49 = vld [vmem:[#allocation2 + $0x36c] sm:$0xf]  ;;  %v2745_v52 = vor.u32 %v3761_v41, %v2742_v42 }
  0xe0   :  { %1274 = vmatpush.bf16.msra.mxu0 %v2741_v13  ;;  %1288 = vmatpush.bf16.msra.mxu1 %v2869_v14  ;;  %v2793_v13 = vor.u32 %v3773_v63, %v2790_v2  ;;  %v2921_v14 = vor.u32 %v3805_v3, %v2918_v4  ;;  %v3757_v54 = vld [vmem:[#allocation2 + $0x2c] sm:$0xf]  ;;  %v2726_v55 = vld [vmem:[#allocation2 + $0x38] sm:$0xf0]  ;;  %v3017_v58 = vor.u32 %v3829_v47, %v3014_v48  ;;  %v3226_v48 = vld [vmem:[#allocation6 + $0x18] sm:$0xf0] }
  0xe1   :  { %1249 = vmatmul.bf16.vlgmr.msrb.gmra.mxu2 %v4398_v36  ;;  %1263 = vmatmul.bf16.vlgmr.msrb.gmra.mxu3 %v4400_v37  ;;  %v3789_v56 = vld [vmem:[#allocation2 + $0x12c] sm:$0xf]  ;;  %v2854_v57 = vld [vmem:[#allocation2 + $0x138] sm:$0xf0]  ;;  %v2729_v2 = vor.u32 %v3757_v54, %v2726_v55  ;;  %v3348_v55 = vld [vmem:[#allocation10 + $0xe0] sm:$0xf] }
  0xe2   :  { %1301 = vmatpush.bf16.msra.mxu2 %v3013_v19  ;;  %1315 = vmatpush.bf16.msra.mxu3 %v3141_v20  ;;  %v3065_v19 = vor.u32 %v3841_v9, %v3062_v10  ;;  %v3193_v20 = vor.u32 %v3873_v11, %v3190_v12  ;;  %v3825_v60 = vld [vmem:[#allocation2 + $0x24c] sm:$0xf]  ;;  %v2857_v3 = vor.u32 %v3789_v56, %v2854_v57  ;;  %v2710_v9 = vld [vmem:[#allocation2 + $0x18] sm:$0xf0]  ;;  %v3914_v56 = vld [vmem:[#allocation10 + $0xec] sm:$0xf0] }
  0xe3   :  { %v3753_v4 = vld [vmem:[#allocation2 + $0xc] sm:$0xf]  ;;  %v2838_v11 = vld [vmem:[#allocation2 + $0x118] sm:$0xf0]  ;;  %v3349_v57 = vor.u32 %v3914_v56, %v3348_v55  ;;  %v3700_v56 = vld [vmem:[#allocation10 + $0x3a0] sm:$0xf] }
  0xe4   :  { %1275 = vmatpush.bf16.msra.mxu0 %v2725_v25  ;;  %1289 = vmatpush.bf16.msra.mxu1 %v2853_v26  ;;  %v2777_v25 = vor.u32 %v3769_v15, %v2774_v16  ;;  %v2905_v26 = vor.u32 %v3801_v17, %v2902_v18  ;;  %v3785_v10 = vld [vmem:[#allocation2 + $0x10c] sm:$0xf]  ;;  %v2982_v16 = vld [vmem:[#allocation2 + $0x238] sm:$0xf0] }
  0xe5   :  { %v3853_v17 = vld [vmem:[#allocation2 + $0x32c] sm:$0xf]  ;;  %v3110_v18 = vld [vmem:[#allocation2 + $0x338] sm:$0xf0]  ;;  %v2841_v21 = vor.u32 %v3785_v10, %v2838_v11  ;;  %v3906_v10 = vld [vmem:[#allocation10 + $0xac] sm:$0xf0] }
  0xe6   :  { %1302 = vmatpush.bf16.msra.mxu2 %v2997_v33  ;;  %1316 = vmatpush.bf16.msra.mxu3 %v3125_v34  ;;  %v3833_v33 = vld [vmem:[#allocation2 + $0x28c] sm:$0xf]  ;;  %v3030_v34 = vld [vmem:[#allocation2 + $0x298] sm:$0xf0]  ;;  %v3113_v28 = vor.u32 %v3853_v17, %v3110_v18  ;;  %v3428_v17 = vld [vmem:[#allocation10 + $0x180] sm:$0xf] }
  0xe7   :  { %v3817_v29 = vld [vmem:[#allocation2 + $0x20c] sm:$0xf] }
  0xe8   :  { %1276 = vmatpush.bf16.msra.mxu0 %v2709_v43  ;;  %1290 = vmatpush.bf16.msra.mxu1 %v2837_v44  ;;  %v3793_v43 = vld [vmem:[#allocation2 + $0x14c] sm:$0xf]  ;;  %v2870_v44 = vld [vmem:[#allocation2 + $0x158] sm:$0xf0] }
  0xe9   :  { %v2873_v53 = vor.u32 %v3793_v43, %v2870_v44  ;;  %v3224_v43 = vld [vmem:[#allocation6 + $0x8] sm:$0xf]  ;;  %v3883_v44 = vld [vmem:[#allocation6 + $0x14] sm:$0xf0] }
  0xea   :  { %1303 = vmatpush.bf16.msra.mxu2 %v2981_v50  ;;  %1317 = vmatpush.bf16.msra.mxu3 %v3109_v51  ;;  %v3142_v50 = vld [vmem:[#allocation2 + $0x378] sm:$0xf0]  ;;  %v1421_v51 = vld [vmem:[#allocation7] sm:$0xff] }
  0xeb   :  { %1277 = vmatmul.bf16.vlgmr.msra.gmra.mxu0 %v4392_v5  ;;  %1291 = vmatmul.bf16.vlgmr.msra.gmra.mxu1 %v4394_v6  ;;  %v3145_v59 = vor.u32 %v3861_v49, %v3142_v50  ;;  %v1426_v63 = vunpack.c.h.b16 %v1421_v51  ;;  %v3225_v49 = vor.u32 %v3883_v44, %v3224_v43 }
  0xec   :  { %1325 = vmatpush.bf16.msrb.mxu0 %v2825_v45  ;;  %1339 = vmatpush.bf16.msrb.mxu1 %v2953_v46  ;;  %v3033_v45 = vor.u32 %v3833_v33, %v3030_v34  ;;  %v3161_v46 = vor.u32 %v3865_v35, %v3158_v38  ;;  %v3849_v33 = vld [vmem:[#allocation2 + $0x30c] sm:$0xf]  ;;  %v3094_v34 = vld [vmem:[#allocation2 + $0x318] sm:$0xf0] }
  0xed   :  { %v1430_v15 = vpack.c.b16 %v1426_v63, %v1426_v63  ;;  %v3097_v42 = vor.u32 %v3849_v33, %v3094_v34  ;;  %v3460_v63 = vld [vmem:[#allocation10 + $0x1c0] sm:$0xf]  ;;  %v3930_v33 = vld [vmem:[#allocation10 + $0x16c] sm:$0xf0] }
  0xee   :  { %1304 = vmatpush.bf16.msra.mxu2 %v2965_v0  ;;  %1318 = vmatpush.bf16.msra.mxu3 %v3093_v1  ;;  %v3857_v0 = vld [vmem:[#allocation2 + $0x34c] sm:$0xf]  ;;  %v3126_v1 = vld [vmem:[#allocation2 + $0x358] sm:$0xf0]  ;;  %v3588_v34 = vld [vmem:[#allocation10 + $0x2c0] sm:$0xf] }
  0xef   :  { %v3129_v12 = vor.u32 %v3857_v0, %v3126_v1  ;;  %v3942_v1 = vld [vmem:[#allocation10 + $0x1cc] sm:$0xf0] }
  0xf0   :  { %1326 = vmatpush.bf16.msrb.mxu0 %v2809_v61  ;;  %1340 = vmatpush.bf16.msrb.mxu1 %v2937_v62  ;;  %v2998_v61 = vld [vmem:[#allocation2 + $0x258] sm:$0xf0]  ;;  %v1425_v62 = vunpack.c.l.b16 %v1421_v51 }
  0xf1   :  { %1305 = vmatmul.bf16.vlgmr.msra.gmra.mxu2 %v4398_v36  ;;  %1319 = vmatmul.bf16.vlgmr.msra.gmra.mxu3 %v4400_v37 }
  0xf2   :  { %1353 = vmatpush.bf16.msrb.mxu2 %v3081_v7  ;;  %1367 = vmatpush.bf16.msrb.mxu3 %v3209_v8  ;;  %v1422_v7 = vld [vmem:[#allocation7 + $0x8] sm:$0xff]  ;;  %v3001_v8 = vor.u32 %v3825_v60, %v2998_v61  ;;  %v3332_v61 = vld [vmem:[#allocation10 + $0xc0] sm:$0xf] }
  0xf3   :  { %v1428_v22 = vunpack.c.h.b16 %v1422_v7 }
  0xf4   :  { %1327 = vmatpush.bf16.msrb.mxu0 %v2793_v13  ;;  %1341 = vmatpush.bf16.msrb.mxu1 %v2921_v14  ;;  %v3821_v13 = vld [vmem:[#allocation2 + $0x22c] sm:$0xf]  ;;  %v1429_v14 = vpack.c.b16 %v1425_v62, %v1425_v62  ;;  %v3910_v62 = vld [vmem:[#allocation10 + $0xcc] sm:$0xf0] }
  0xf5   :  { %v2985_v27 = vor.u32 %v3821_v13, %v2982_v16  ;;  %v1432_v38 = vpack.c.b16 %v1428_v22, %v1428_v22  ;;  %v3333_v0 = vor.u32 %v3910_v62, %v3332_v61  ;;  %v3938_v13 = vld [vmem:[#allocation10 + $0x1ac] sm:$0xf0] }
  0xf6   :  { %1354 = vmatpush.bf16.msrb.mxu2 %v3065_v19  ;;  %1368 = vmatpush.bf16.msrb.mxu3 %v3193_v20  ;;  %v1427_v19 = vunpack.c.l.b16 %v1422_v7  ;;  %v2713_v20 = vor.u32 %v3753_v4, %v2710_v9  ;;  %v1434_v30 = vsel %vm195_vm0, %v1429_v14, 0  ;;  %v3461_v4 = vor.u32 %v3942_v1, %v3460_v63  ;;  %v3316_v9 = vld [vmem:[#allocation10 + $0xa0] sm:$0xf]  ;;  %v3902_v16 = vld [vmem:[#allocation10 + $0x8c] sm:$0xf0] }
  0xf7   :  { %v1443_v47 = vsel %vm195_vm0, %v1432_v38, 0  ;;  %v3317_v11 = vor.u32 %v3906_v10, %v3316_v9  ;;  %v3974_v38 = vld [vmem:[#allocation10 + $0x2cc] sm:$0xf0]  ;;  %v3380_v63 = vld [vmem:[#allocation10 + $0x120] sm:$0xf] }
  0xf8   :  { %1328 = vmatpush.bf16.msrb.mxu0 %v2777_v25  ;;  %1342 = vmatpush.bf16.msrb.mxu1 %v2905_v26  ;;  %v3880_v25 = vld [vmem:[#allocation6 + $0x4] sm:$0xf]  ;;  %v3218_v26 = vld [vmem:[#allocation6 + $0x10] sm:$0xf0]  ;;  %v1431_v35 = vpack.c.b16 %v1427_v19, %v1427_v19  ;;  %v3589_v43 = vor.u32 %v3974_v38, %v3588_v34  ;;  %v3912_v34 = vld [vmem:[#allocation10 + $0xe4] sm:$0xf] }
  0xf9   :  { %v3934_v19 = vld [vmem:[#allocation10 + $0x18c] sm:$0xf0]  ;;  %v3556_v1 = vld [vmem:[#allocation10 + $0x280] sm:$0xf]  ;;  %v3944_v38 = vld [vmem:[#allocation10 + $0x1e4] sm:$0xf] }
  0xfa   :  { %1355 = vmatpush.bf16.msrb.mxu2 %v3049_v31  ;;  %1369 = vmatpush.bf16.msrb.mxu3 %v3177_v32  ;;  %v1437_v31 = vsel %vm195_vm0, %v1430_v15, 0  ;;  %v2966_v32 = vld [vmem:[#allocation2 + $0x218] sm:$0xf0]  ;;  %v3300_v15 = vld [vmem:[#allocation10 + $0x80] sm:$0xf]  ;;  %v3429_v22 = vor.u32 %v3934_v19, %v3428_v17 }
  0xfb   :  { %v2969_v41 = vor.u32 %v3817_v29, %v2966_v32  ;;  %v3301_v18 = vor.u32 %v3902_v16, %v3300_v15  ;;  %v3412_v29 = vld [vmem:[#allocation10 + $0x160] sm:$0xf]  ;;  %v3890_v61 = vld [vmem:[#allocation10 + $0x2c] sm:$0xf0] }
  0xfc   :  { %1329 = vmatpush.bf16.msrb.mxu0 %v2761_v39  ;;  %1343 = vmatpush.bf16.msrb.mxu1 %v2889_v40  ;;  %v3217_v39 = vor.u32 %v3882_v24, %v3216_v23  ;;  %v3221_v40 = vor.u32 %v3880_v25, %v3218_v26  ;;  %v3732_v24 = vld [vmem:[#allocation10 + $0x3e0] sm:$0xf]  ;;  %v4010_v25 = vld [vmem:[#allocation10 + $0x3ec] sm:$0xf0] }
  0xfd   :  { %v3733_v26 = vor.u32 %v4010_v25, %v3732_v24  ;;  %v3236_v19 = vld [vmem:[#allocation10] sm:$0xf]  ;;  %v3962_v25 = vld [vmem:[#allocation10 + $0x26c] sm:$0xf0] }
  0xfe   :  { %1356 = vmatpush.bf16.msrb.mxu2 %v3033_v45  ;;  %1370 = vmatpush.bf16.msrb.mxu3 %v3161_v46  ;;  %v3881_v45 = vld [vmem:[#allocation6 + $0xc] sm:$0xf]  ;;  %v1440_v46 = vsel %vm195_vm0, %v1431_v35, 0  ;;  %v3413_v35 = vor.u32 %v3930_v33, %v3412_v29  ;;  %v3540_v24 = vld [vmem:[#allocation10 + $0x260] sm:$0xf] }
  0xff   :  { %v3229_v50 = vor.u32 %v3881_v45, %v3226_v48  ;;  %v3268_v45 = vld [vmem:[#allocation10 + $0x40] sm:$0xf]  ;;  %v3994_v29 = vld [vmem:[#allocation10 + $0x36c] sm:$0xf0] }
 0x100   :  { %1330 = vmatpush.bf16.msrb.mxu0 %v2745_v52  ;;  %1344 = vmatpush.bf16.msrb.mxu1 %v2873_v53 }
 0x102   :  { %1357 = vmatpush.bf16.msrb.mxu2 %v3017_v58  ;;  %1371 = vmatpush.bf16.msrb.mxu3 %v3145_v59  ;;  %v3476_v58 = vld [vmem:[#allocation10 + $0x1e0] sm:$0xf]  ;;  %v3946_v59 = vld [vmem:[#allocation10 + $0x1ec] sm:$0xf0] }
 0x103   :  { %v3477_v60 = vor.u32 %v3946_v59, %v3476_v58  ;;  %v4465_v59 = vld [vmem:[%s4603_s6] sm:$0xf] }
 0x104   :  { %1331 = vmatpush.bf16.msrb.mxu0 %v2729_v2  ;;  %1345 = vmatpush.bf16.msrb.mxu1 %v2857_v3 }
 0x106   :  { %1358 = vmatpush.bf16.msrb.mxu2 %v3001_v8  ;;  %1372 = vmatpush.bf16.msrb.mxu3 %v3129_v12  ;;  %v3444_v12 = vld [vmem:[#allocation10 + $0x1a0] sm:$0xf] }
 0x107   :  { %v3445_v14 = vor.u32 %v3938_v13, %v3444_v12  ;;  %v3684_v12 = vld [vmem:[#allocation10 + $0x380] sm:$0xf]  ;;  %v3998_v13 = vld [vmem:[#allocation10 + $0x38c] sm:$0xf0] }
 0x108   :  { %1332 = vmatpush.bf16.msrb.mxu0 %v2713_v20  ;;  %1346 = vmatpush.bf16.msrb.mxu1 %v2841_v21  ;;  %v3604_v20 = vld [vmem:[#allocation10 + $0x2e0] sm:$0xf]  ;;  %v3978_v21 = vld [vmem:[#allocation10 + $0x2ec] sm:$0xf0]  ;;  %v3685_v16 = vor.u32 %v3998_v13, %v3684_v12  ;;  %v3904_v13 = vld [vmem:[#allocation10 + $0xa4] sm:$0xf] }
 0x109   :  { %v3605_v23 = vor.u32 %v3978_v21, %v3604_v20  ;;  %v3886_v20 = vld [vmem:[#allocation10 + $0xc] sm:$0xf0]  ;;  %v3364_v21 = vld [vmem:[#allocation10 + $0x100] sm:$0xf] }
 0x10a   :  { %1359 = vmatpush.bf16.msrb.mxu2 %v2985_v27  ;;  %1373 = vmatpush.bf16.msrb.mxu3 %v3113_v28  ;;  %v3284_v27 = vld [vmem:[#allocation10 + $0x60] sm:$0xf]  ;;  %v3898_v28 = vld [vmem:[#allocation10 + $0x6c] sm:$0xf0] }
 0x10b   :  { %1333 = vmatmul.bf16.vlgmr.msrb.gmra.mxu0 %v4392_v5  ;;  %1347 = vmatmul.bf16.vlgmr.msrb.gmra.mxu1 %v4394_v6  ;;  %v4023_v5 = vld [vmem:[%s4598_s1] sm:$0xff]  ;;  %v3285_v32 = vor.u32 %v3898_v28, %v3284_v27  ;;  %v3541_v27 = vor.u32 %v3962_v25, %v3540_v24  ;;  %v3668_v28 = vld [vmem:[#allocation10 + $0x360] sm:$0xf]  ;;  %v3986_v12 = vld [vmem:[#allocation10 + $0x32c] sm:$0xf0] }
 0x10c   :  { %1452 = vmatpush.bf16.msra.mxu0 %v1434_v30  ;;  %1466 = vmatpush.bf16.msra.mxu1 %v1437_v31  ;;  %v4024_v6 = vld [vmem:[%s4597_s0] sm:$0xff]  ;;  %v3669_v33 = vor.u32 %v3994_v29, %v3668_v28  ;;  %v3446_v24 = vld [vmem:[#allocation10 + $0x1b0] sm:$0xf0]  ;;  %v3620_v28 = vld [vmem:[#allocation10 + $0x300] sm:$0xf] }
 0x10e   :  { %1360 = vmatpush.bf16.msrb.mxu2 %v2969_v41  ;;  %1374 = vmatpush.bf16.msrb.mxu3 %v3097_v42 }
 0x110   :  { %1528 = vmatpush.bf16.msrb.mxu0 %v3217_v39  ;;  %1542 = vmatpush.bf16.msrb.mxu1 %v3221_v40  ;;  %v3716_v39 = vld [vmem:[#allocation10 + $0x3c0] sm:$0xf]  ;;  %v4006_v40 = vld [vmem:[#allocation10 + $0x3cc] sm:$0xf0] }
 0x111   :  { %1361 = vmatmul.bf16.vlgmr.msrb.gmra.mxu2 %v4398_v36  ;;  %1375 = vmatmul.bf16.vlgmr.msrb.gmra.mxu3 %v4400_v37  ;;  %v3717_v44 = vor.u32 %v4006_v40, %v3716_v39  ;;  %v3478_v40 = vld [vmem:[#allocation10 + $0x1f0] sm:$0xf0] }
 0x112   :  { %1480 = vmatpush.bf16.msra.mxu2 %v1440_v46  ;;  %1494 = vmatpush.bf16.msra.mxu3 %v1443_v47  ;;  %v3894_v46 = vld [vmem:[#allocation10 + $0x4c] sm:$0xf0]  ;;  %v3396_v47 = vld [vmem:[#allocation10 + $0x140] sm:$0xf] }
 0x113   :  { %v3269_v48 = vor.u32 %v3894_v46, %v3268_v45  ;;  %v510_v45 = vperm.slane %v4465_v59, 1  ;;  %v511_v46 = vperm.slane %v4465_v59, 2 }
 0x116   :  { %1556 = vmatpush.bf16.msrb.mxu2 %v3225_v49  ;;  %1570 = vmatpush.bf16.msrb.mxu3 %v3229_v50  ;;  %v3926_v49 = vld [vmem:[#allocation10 + $0x14c] sm:$0xf0]  ;;  %v3572_v50 = vld [vmem:[#allocation10 + $0x2a0] sm:$0xf] }
 0x11b   :  { %3210 = vmatmul.msk.bf16.vlgmr.msra.gmra.mxu0 %vm191_vm1, %v4023_v5  ;;  %3211 = vmatmul.msk.bf16.vlgmr.msra.gmra.mxu1 %vm191_vm1, %v4023_v5 }
 0x11c   :  { %2385 = vmatpush.bf16.msra.mxu0 %v3349_v57  ;;  %2399 = vmatpush.bf16.msra.mxu1 %v3477_v60  ;;  %v4002_v57 = vld [vmem:[#allocation10 + $0x3ac] sm:$0xf0]  ;;  %v3252_v60 = vld [vmem:[#allocation10 + $0x20] sm:$0xf] }
 0x11d   :  { %v3701_v58 = vor.u32 %v4002_v57, %v3700_v56  ;;  %v3253_v62 = vor.u32 %v3890_v61, %v3252_v60 }
 0x120   :  { %2386 = vmatpush.bf16.msra.mxu0 %v3333_v0  ;;  %2400 = vmatpush.bf16.msra.mxu1 %v3461_v4  ;;  %v3922_v0 = vld [vmem:[#allocation10 + $0x12c] sm:$0xf0] }
 0x121   :  { %3212 = vmatmul.msk.bf16.vlgmr.msra.gmra.mxu2 %vm191_vm1, %v4023_v5  ;;  %3213 = vmatmul.msk.bf16.vlgmr.msra.gmra.mxu3 %vm191_vm1, %v4023_v5  ;;  %v3970_v5 = vld [vmem:[#allocation10 + $0x2ac] sm:$0xf0]  ;;  %v3381_v10 = vor.u32 %v3922_v0, %v3380_v63  ;;  %v3508_v63 = vld [vmem:[#allocation10 + $0x220] sm:$0xf] }
 0x122   :  { %2413 = vmatpush.bf16.msra.mxu2 %v3605_v23  ;;  %2427 = vmatpush.bf16.msra.mxu3 %v3733_v26  ;;  %v3573_v55 = vor.u32 %v3970_v5, %v3572_v50  ;;  %v3918_v23 = vld [vmem:[#allocation10 + $0x10c] sm:$0xf0]  ;;  %v3908_v5 = vld [vmem:[#allocation10 + $0xc4] sm:$0xf] }
 0x123   :  { %v3365_v26 = vor.u32 %v3918_v23, %v3364_v21  ;;  %v3954_v0 = vld [vmem:[#allocation10 + $0x22c] sm:$0xf0]  ;;  %v3936_v23 = vld [vmem:[#allocation10 + $0x1a4] sm:$0xf] }
 0x124   :  { %2387 = vmatpush.bf16.msra.mxu0 %v3317_v11  ;;  %2401 = vmatpush.bf16.msra.mxu1 %v3445_v14  ;;  %v3966_v11 = vld [vmem:[#allocation10 + $0x28c] sm:$0xf0]  ;;  %v509_v14 = vperm.slane %v4465_v59, 0  ;;  %v3449_v25 = vor.u32 %v3936_v23, %v3446_v24 }
 0x125   :  { %v3557_v15 = vor.u32 %v3966_v11, %v3556_v1  ;;  %v3636_v1 = vld [vmem:[#allocation10 + $0x320] sm:$0xf]  ;;  %v3509_v11 = vor.u32 %v3954_v0, %v3508_v63 }
 0x126   :  { %2414 = vmatpush.bf16.msra.mxu2 %v3589_v43  ;;  %2428 = vmatpush.bf16.msra.mxu3 %v3717_v44  ;;  %v3524_v43 = vld [vmem:[#allocation10 + $0x240] sm:$0xf]  ;;  %v3958_v44 = vld [vmem:[#allocation10 + $0x24c] sm:$0xf0] }
 0x128   :  { %2388 = vmatpush.bf16.msra.mxu0 %v3301_v18  ;;  %2402 = vmatpush.bf16.msra.mxu1 %v3429_v22  ;;  %v3237_v22 = vor.u32 %v3886_v20, %v3236_v19 }
 0x12a   :  { %2415 = vmatpush.bf16.msra.mxu2 %v3573_v55  ;;  %2429 = vmatpush.bf16.msra.mxu3 %v3701_v58  ;;  %v3940_v55 = vld [vmem:[#allocation10 + $0x1c4] sm:$0xf]  ;;  %v3462_v58 = vld [vmem:[#allocation10 + $0x1d0] sm:$0xf0] }
 0x12b   :  { %3230 = vmatmul.msk.bf16.vlgmr.msrb.gmra.mxu0 %vm289_vm2, %v4024_v6  ;;  %3231 = vmatmul.msk.bf16.vlgmr.msrb.gmra.mxu1 %vm289_vm2, %v4024_v6 }
 0x12c   :  { %2389 = vmatpush.bf16.msra.mxu0 %v3285_v32  ;;  %2403 = vmatpush.bf16.msra.mxu1 %v3413_v35  ;;  %v3350_v35 = vld [vmem:[#allocation10 + $0xf0] sm:$0xf0] }
 0x12d   :  { %v3353_v39 = vor.u32 %v3912_v34, %v3350_v35 }
 0x12e   :  { %2416 = vmatpush.bf16.msra.mxu2 %v3557_v15  ;;  %2430 = vmatpush.bf16.msra.mxu3 %v3685_v16  ;;  %v3318_v15 = vld [vmem:[#allocation10 + $0xb0] sm:$0xf0] }
 0x130   :  { %2390 = vmatpush.bf16.msra.mxu0 %v3269_v48  ;;  %v3525_v48 = vor.u32 %v3958_v44, %v3524_v43  ;;  %v3430_v43 = vld [vmem:[#allocation10 + $0x190] sm:$0xf0] }
 0x131   :  { %3232 = vmatmul.msk.bf16.vlgmr.msrb.gmra.mxu2 %vm289_vm2, %v4024_v6  ;;  %3233 = vmatmul.msk.bf16.vlgmr.msrb.gmra.mxu3 %vm289_vm2, %v4024_v6  ;;  %v3397_v6 = vor.u32 %v3926_v49, %v3396_v47  ;;  %v3481_v47 = vor.u32 %v3944_v38, %v3478_v40  ;;  %v3652_v49 = vld [vmem:[#allocation10 + $0x340] sm:$0xf]  ;;  %v3932_v40 = vld [vmem:[#allocation10 + $0x184] sm:$0xf] }
 0x132   :  { %2417 = vmatpush.bf16.msra.mxu2 %v3541_v27  ;;  %2431 = vmatpush.bf16.msra.mxu3 %v3669_v33  ;;  %v3950_v27 = vld [vmem:[#allocation10 + $0x20c] sm:$0xf0]  ;;  %v3900_v33 = vld [vmem:[#allocation10 + $0x84] sm:$0xf] }
 0x133   :  { %2404 = vmatpush.bf16.msra.mxu1 %v3397_v6  ;;  %v3334_v6 = vld [vmem:[#allocation10 + $0xd0] sm:$0xf0] }
 0x134   :  { %2391 = vmatpush.bf16.msra.mxu0 %v3253_v62  ;;  %v3337_v57 = vor.u32 %v3908_v5, %v3334_v6  ;;  %v3465_v62 = vor.u32 %v3940_v55, %v3462_v58  ;;  %v3734_v55 = vld [vmem:[#allocation10 + $0x3f0] sm:$0xf0]  ;;  %v3896_v58 = vld [vmem:[#allocation10 + $0x64] sm:$0xf] }
 0x136   :  { %2418 = vmatpush.bf16.msra.mxu2 %v3525_v48  ;;  %v3606_v48 = vld [vmem:[#allocation10 + $0x2f0] sm:$0xf0] }
 0x137   :  { %2405 = vmatpush.bf16.msra.mxu1 %v3381_v10 }
 0x138   :  { %2392 = vmatpush.bf16.msra.mxu0 %v3237_v22  ;;  %v3321_v22 = vor.u32 %v3904_v13, %v3318_v15  ;;  %v3590_v15 = vld [vmem:[#allocation10 + $0x2d0] sm:$0xf0] }
 0x13a   :  { %2419 = vmatpush.bf16.msra.mxu2 %v3509_v11  ;;  %v3972_v11 = vld [vmem:[#allocation10 + $0x2c4] sm:$0xf] }
 0x13b   :  { %2406 = vmatpush.bf16.msra.mxu1 %v3365_v26  ;;  %v3492_v26 = vld [vmem:[#allocation10 + $0x200] sm:$0xf] }
 0x13c   :  { %2441 = vmatpush.bf16.msrb.mxu0 %v3353_v39  ;;  %v3302_v39 = vld [vmem:[#allocation10 + $0x90] sm:$0xf0] }
 0x13d   :  { %v3305_v44 = vor.u32 %v3900_v33, %v3302_v39 }
 0x13f   :  { %2455 = vmatpush.bf16.msrb.mxu1 %v3481_v47  ;;  %v3976_v47 = vld [vmem:[#allocation10 + $0x2e4] sm:$0xf] }
 0x140   :  { %2442 = vmatpush.bf16.msrb.mxu0 %v3337_v57  ;;  %v512_v57 = vperm.slane %v4465_v59, 3  ;;  %v3956_v59 = vld [vmem:[#allocation10 + $0x244] sm:$0xf] }
 0x143   :  { %2456 = vmatpush.bf16.msrb.mxu1 %v3465_v62  ;;  %v3286_v62 = vld [vmem:[#allocation10 + $0x70] sm:$0xf0] }
 0x144   :  { %2443 = vmatpush.bf16.msrb.mxu0 %v3321_v22  ;;  %v3289_v0 = vor.u32 %v3896_v58, %v3286_v62  ;;  %v3593_v22 = vor.u32 %v3972_v11, %v3590_v15  ;;  %v3238_v15 = vld [vmem:[#allocation10 + $0x10] sm:$0xf0] }
 0x147   :  { %v4434_v36 = vpop.f32.mrf.mxu0  ;;  %v4436_v37 = vpop.f32.mrf.mxu1  ;;  %2457 = vmatpush.bf16.msrb.mxu1 %v3449_v25  ;;  %v3924_v25 = vld [vmem:[#allocation10 + $0x144] sm:$0xf] }
 0x148   :  { %v1167_v32 = vadd.f32 %v4434_v36, %v509_v14  ;;  %v3990_v36 = vld [vmem:[#allocation10 + $0x34c] sm:$0xf0]  ;;  %2444 = vmatpush.bf16.msrb.mxu0 %v3305_v44 }
 0x149   :  { %v3653_v50 = vor.u32 %v3990_v36, %v3652_v49  ;;  %v4008_v49 = vld [vmem:[#allocation10 + $0x3e4] sm:$0xf] }
 0x14a   :  { %v1181_v56 = vadd.f32 %v4436_v37, %v1167_v32  ;;  %v4487_v37 = vld [vmem:[#allocation4] sm:$0xf]  ;;  %v3982_v32 = vld [vmem:[#allocation10 + $0x30c] sm:$0xf0]  ;;  %v3737_v63 = vor.u32 %v4008_v49, %v3734_v55  ;;  %v3920_v49 = vld [vmem:[#allocation10 + $0x124] sm:$0xf] }
 0x14b   :  { %2432 = vmatpush.bf16.msra.mxu3 %v3653_v50  ;;  %v3621_v38 = vor.u32 %v3982_v32, %v3620_v28  ;;  %v1392_v50 = vperm.slane %v4487_v37, 1  ;;  %v3574_v28 = vld [vmem:[#allocation10 + $0x2b0] sm:$0xf0] }
 0x14c   :  { %2445 = vmatpush.bf16.msrb.mxu0 %v3289_v0 }
 0x14f   :  { %v4438_v51 = vpop.f32.mrf.mxu0  ;;  %v4440_v52 = vpop.f32.mrf.mxu1 }
 0x154   :  { %v4442_v53 = vpop.f32.mrf.mxu2  ;;  %v4444_v54 = vpop.f32.mrf.mxu3 }
 0x155   :  { %v1195_v10 = vadd.f32 %v4442_v53, %v1181_v56  ;;  %v3637_v53 = vor.u32 %v3986_v12, %v3636_v1  ;;  %v3928_v1 = vld [vmem:[#allocation10 + $0x164] sm:$0xf] }
 0x157   :  { %v4496_v29 = vadd.f32 %v4444_v54, %v1195_v10  ;;  %2433 = vmatpush.bf16.msra.mxu3 %v3637_v53  ;;  %v3433_v54 = vor.u32 %v3932_v40, %v3430_v43  ;;  %v3414_v10 = vld [vmem:[#allocation10 + $0x170] sm:$0xf0] }
 0x158   :  { %v4446_v2 = vpop.f32.mrf.mxu0  ;;  %v4448_v3 = vpop.f32.mrf.mxu1  ;;  %v3417_v13 = vor.u32 %v3928_v1, %v3414_v10 }
 0x159   :  { %v1223_v16 = vadd.f32 %v4446_v2, %v510_v45  ;;  %v1391_v2 = vperm.slane %v4487_v37, 0  ;;  %v1381_v56 = vmax.f32 %v4496_v29, 0.0  ;;  %2458 = vmatpush.bf16.msrb.mxu1 %v3433_v54 }
 0x15b   :  { %v1237_v34 = vadd.f32 %v4448_v3, %v1223_v16  ;;  %2434 = vmatpush.bf16.msra.mxu3 %v3621_v38  ;;  %v4004_v16 = vld [vmem:[#allocation10 + $0x3c4] sm:$0xf] }
 0x15c   :  { %v4450_v7 = vpop.f32.mrf.mxu2  ;;  %v4452_v8 = vpop.f32.mrf.mxu3 }
 0x15d   :  { %2459 = vmatpush.bf16.msrb.mxu1 %v3417_v13  ;;  %v1394_v13 = vperm.slane %v4487_v37, 3 }
 0x15f   :  { %2483 = vmatpush.bf16.msrb.mxu3 %v3737_v63  ;;  %v3686_v63 = vld [vmem:[#allocation10 + $0x390] sm:$0xf0] }
 0x160   :  { %v4454_v30 = vpop.f32.mrf.mxu0  ;;  %v4456_v31 = vpop.f32.mrf.mxu1 }
 0x161   :  { %v1225_v12 = vadd.f32 %v4454_v30, %v510_v45  ;;  %v3892_v30 = vld [vmem:[#allocation10 + $0x44] sm:$0xf]  ;;  %v3270_v45 = vld [vmem:[#allocation10 + $0x50] sm:$0xf0] }
 0x164   :  { %v4458_v41 = vpop.f32.mrf.mxu2  ;;  %v4460_v42 = vpop.f32.mrf.mxu3 }
 0x165   :  { %v1251_v36 = vadd.f32 %v4458_v41, %v1237_v34  ;;  %v1169_v41 = vadd.f32 %v4438_v51, %v509_v14 }
 0x168   :  { %v4467_v4 = vpop.f32.mrf.mxu0  ;;  %v4469_v9 = vpop.f32.mrf.mxu1 }
 0x169   :  { %v1279_v19 = vadd.f32 %v4467_v4, %v511_v46  ;;  %v3493_v4 = vor.u32 %v3950_v27, %v3492_v26  ;;  %v1183_v26 = vadd.f32 %v4440_v52, %v1169_v41  ;;  %v3968_v27 = vld [vmem:[#allocation10 + $0x2a4] sm:$0xf]  ;;  %v1393_v52 = vperm.slane %v4487_v37, 2 }
 0x16a   :  { %v3577_v34 = vor.u32 %v3968_v27, %v3574_v28 }
 0x16b   :  { %v1293_v35 = vadd.f32 %v4469_v9, %v1279_v19  ;;  %v3609_v9 = vor.u32 %v3976_v47, %v3606_v48  ;;  %2420 = vmatpush.bf16.msra.mxu2 %v3493_v4  ;;  %v3718_v19 = vld [vmem:[#allocation10 + $0x3d0] sm:$0xf0]  ;;  %v1239_v4 = vadd.f32 %v4456_v31, %v1225_v12  ;;  %v1197_v31 = vadd.f32 %v4450_v7, %v1183_v26  ;;  %v3888_v47 = vld [vmem:[#allocation10 + $0x24] sm:$0xf] }
 0x16c   :  { %v4472_v17 = vpop.f32.mrf.mxu2  ;;  %v4474_v18 = vpop.f32.mrf.mxu3  ;;  %v3721_v23 = vor.u32 %v4004_v16, %v3718_v19  ;;  %v3254_v48 = vld [vmem:[#allocation10 + $0x30] sm:$0xf0]  ;;  %v3996_v7 = vld [vmem:[#allocation10 + $0x384] sm:$0xf]  ;;  %v1399_v16 = vmul.f32 %v1391_v2, %v1381_v56 }
 0x16d   :  { %v1253_v44 = vadd.f32 %v4472_v17, %v1239_v4  ;;  %v3689_v1 = vor.u32 %v3996_v7, %v3686_v63  ;;  %v1211_v10 = vadd.f32 %v4452_v8, %v1197_v31  ;;  %v3366_v8 = vld [vmem:[#allocation10 + $0x110] sm:$0xf0]  ;;  %v3948_v7 = vld [vmem:[#allocation10 + $0x204] sm:$0xf] }
 0x16e   :  { %2484 = vmatpush.bf16.msrb.mxu3 %v3721_v23  ;;  %v3670_v56 = vld [vmem:[#allocation10 + $0x370] sm:$0xf0] }
 0x16f   :  { %2469 = vmatpush.bf16.msrb.mxu2 %v3609_v9  ;;  %v3558_v9 = vld [vmem:[#allocation10 + $0x290] sm:$0xf0]  ;;  %v1267_v11 = vadd.f32 %v4474_v18, %v1253_v44  ;;  %v1385_v27 = vmax.f32 %v1211_v10, 0.0 }
 0x170   :  { %v4482_v60 = vpop.f32.mrf.mxu0  ;;  %v4484_v61 = vpop.f32.mrf.mxu1  ;;  %v3494_v63 = vld [vmem:[#allocation10 + $0x210] sm:$0xf0] }
 0x171   :  { %v1281_v24 = vadd.f32 %v4482_v60, %v511_v46  ;;  %v4000_v46 = vld [vmem:[#allocation10 + $0x3a4] sm:$0xf]  ;;  %v3702_v60 = vld [vmem:[#allocation10 + $0x3b0] sm:$0xf0]  ;;  %v1386_v28 = vmax.f32 %v1267_v11, 0.0 }
 0x172   :  { %v3705_v43 = vor.u32 %v4000_v46, %v3702_v60 }
 0x173   :  { %2470 = vmatpush.bf16.msrb.mxu2 %v3593_v22  ;;  %v1295_v54 = vadd.f32 %v4484_v61, %v1281_v24  ;;  %v3542_v24 = vld [vmem:[#allocation10 + $0x270] sm:$0xf0]  ;;  %v1404_v31 = vmul.f32 %v1392_v50, %v1386_v28 }
 0x174   :  { %v1306_v20 = vpop.f32.mrf.mxu2  ;;  %v1320_v21 = vpop.f32.mrf.mxu3  ;;  %2485 = vmatpush.bf16.msrb.mxu3 %v3705_v43 }
 0x175   :  { %v1307_v5 = vadd.f32 %v1306_v20, %v1293_v35  ;;  %v1265_v20 = vadd.f32 %v4460_v42, %v1251_v36  ;;  %v3273_v42 = vor.u32 %v3892_v30, %v3270_v45  ;;  %v3257_v36 = vor.u32 %v3888_v47, %v3254_v48  ;;  %v3992_v30 = vld [vmem:[#allocation10 + $0x364] sm:$0xf]  ;;  %v3510_v48 = vld [vmem:[#allocation10 + $0x230] sm:$0xf0] }
 0x176   :  { %v3952_v47 = vld [vmem:[#allocation10 + $0x224] sm:$0xf] }
 0x177   :  { %v4514_v53 = vadd.f32 %v1320_v21, %v1307_v5  ;;  %v3398_v21 = vld [vmem:[#allocation10 + $0x150] sm:$0xf0]  ;;  %v1382_v35 = vmax.f32 %v1265_v20, 0.0  ;;  %2446 = vmatpush.bf16.msrb.mxu0 %v3273_v42  ;;  %2471 = vmatpush.bf16.msrb.mxu2 %v3577_v34 }
 0x178   :  { %v3401_v33 = vor.u32 %v3924_v25, %v3398_v21  ;;  %v3382_v5 = vld [vmem:[#allocation10 + $0x130] sm:$0xf0]  ;;  %2486 = vmatpush.bf16.msrb.mxu3 %v3689_v1  ;;  %v3673_v21 = vor.u32 %v3992_v30, %v3670_v56  ;;  %v3356_v30 = vld [vmem:[#allocation10 + $0xe8] sm:$0xf] }
 0x179   :  { %v1383_v38 = vmax.f32 %v4514_v53, 0.0  ;;  %v3385_v62 = vor.u32 %v3920_v49, %v3382_v5  ;;  %v1400_v17 = vmul.f32 %v1392_v50, %v1382_v35  ;;  %v3916_v53 = vld [vmem:[#allocation10 + $0x104] sm:$0xf]  ;;  %v3654_v35 = vld [vmem:[#allocation10 + $0x350] sm:$0xf0] }
 0x17a   :  { %2460 = vmatpush.bf16.msrb.mxu1 %v3401_v33  ;;  %v3369_v29 = vor.u32 %v3916_v53, %v3366_v8  ;;  %v3984_v49 = vld [vmem:[#allocation10 + $0x324] sm:$0xf] }
 0x17b   :  { %v1401_v19 = vmul.f32 %v1393_v52, %v1383_v38  ;;  %2447 = vmatpush.bf16.msrb.mxu0 %v3257_v36  ;;  %v1407_v26 = vadd.f32 %v1400_v17, %v1399_v16  ;;  %v3980_v17 = vld [vmem:[#allocation10 + $0x304] sm:$0xf]  ;;  %v1577_v16 = vld [vmem:[#allocation9] sm:$0xf] }
 0x17c   :  { %v1308_v51 = vpop.f32.mrf.mxu2  ;;  %v4516_v14 = vpop.f32.mrf.mxu3  ;;  %2487 = vmatpush.bf16.msrb.mxu3 %v3673_v21  ;;  %v1579_v37 = vperm.slane %v1577_v16, 0  ;;  %v1580_v8 = vperm.slane %v1577_v16, 1  ;;  %v3484_v21 = vld [vmem:[#allocation10 + $0x1e8] sm:$0xf] }
 0x17d   :  { %v1309_v55 = vadd.f32 %v1308_v51, %v1295_v54  ;;  %v3960_v51 = vld [vmem:[#allocation10 + $0x264] sm:$0xf]  ;;  %v1408_v4 = vadd.f32 %v1407_v26, %v1401_v19 }
 0x17e   :  { %2461 = vmatpush.bf16.msrb.mxu1 %v3385_v62  ;;  %v3545_v42 = vor.u32 %v3960_v51, %v3542_v24 }
 0x17f   :  { %v1323_v18 = vadd.f32 %v4516_v14, %v1309_v55 }
 0x181   :  { %v1387_v33 = vmax.f32 %v1323_v18, 0.0 }
 0x182   :  { %2462 = vmatpush.bf16.msrb.mxu1 %v3369_v29 }
 0x183   :  { %v1405_v36 = vmul.f32 %v1393_v52, %v1387_v33  ;;  %v3622_v52 = vld [vmem:[#allocation10 + $0x310] sm:$0xf0]  ;;  %v3340_v33 = vld [vmem:[#allocation10 + $0xc8] sm:$0xf] }
 0x184   :  { %v3625_v11 = vor.u32 %v3980_v17, %v3622_v52  ;;  %v3612_v52 = vld [vmem:[#allocation10 + $0x2e8] sm:$0xf] }
 0x188   :  { %v1334_v6 = vpop.f32.mrf.mxu0  ;;  %v4503_v3 = vpop.f32.mrf.mxu1 }
 0x189   :  { %v1335_v32 = vadd.f32 %v1334_v6, %v512_v57  ;;  %v3964_v6 = vld [vmem:[#allocation10 + $0x284] sm:$0xf] }
 0x18a   :  { %v3561_v41 = vor.u32 %v3964_v6, %v3558_v9  ;;  %v3513_v6 = vor.u32 %v3952_v47, %v3510_v48  ;;  %v3638_v9 = vld [vmem:[#allocation10 + $0x330] sm:$0xf0]  ;;  %v3324_v48 = vld [vmem:[#allocation10 + $0xa8] sm:$0xf] }
 0x18b   :  { %v1349_v58 = vadd.f32 %v4503_v3, %v1335_v32  ;;  %v3884_v3 = vld [vmem:[#allocation10 + $0x4] sm:$0xf]  ;;  %v3641_v50 = vor.u32 %v3984_v49, %v3638_v9  ;;  %v3907_v49 = vld [vmem:[#allocation10 + $0xb4] sm:$0xf0] }
 0x18c   :  { %2472 = vmatpush.bf16.msrb.mxu2 %v3561_v41  ;;  %v3241_v20 = vor.u32 %v3884_v3, %v3238_v15  ;;  %v3988_v32 = vld [vmem:[#allocation10 + $0x344] sm:$0xf] }
 0x18d   :  { %v3657_v43 = vor.u32 %v3988_v32, %v3654_v35  ;;  %v3468_v35 = vld [vmem:[#allocation10 + $0x1c8] sm:$0xf] }
 0x18e   :  { %2448 = vmatpush.bf16.msrb.mxu0 %v3241_v20 }
 0x18f   :  { %2488 = vmatpush.bf16.msrb.mxu3 %v3657_v43  ;;  %v1581_v43 = vperm.slane %v1577_v16, 2 }
 0x190   :  { %v1336_v39 = vpop.f32.mrf.mxu0  ;;  %v4527_v40 = vpop.f32.mrf.mxu1  ;;  %2473 = vmatpush.bf16.msrb.mxu2 %v3545_v42  ;;  %v3915_v42 = vld [vmem:[#allocation10 + $0xf4] sm:$0xf0] }
 0x191   :  { %v1337_v22 = vadd.f32 %v1336_v39, %v512_v57  ;;  %v3526_v57 = vld [vmem:[#allocation10 + $0x250] sm:$0xf0] }
 0x192   :  { %v3529_v60 = vor.u32 %v3956_v59, %v3526_v57 }
 0x193   :  { %v1351_v34 = vadd.f32 %v4527_v40, %v1337_v22  ;;  %v1403_v40 = vmul.f32 %v1391_v2, %v1385_v27  ;;  %2489 = vmatpush.bf16.msrb.mxu3 %v3641_v50  ;;  %v3947_v27 = vld [vmem:[#allocation10 + $0x1f4] sm:$0xf0] }
 0x194   :  { %v1362_v61 = vpop.f32.mrf.mxu2  ;;  %v1376_v0 = vpop.f32.mrf.mxu3  ;;  %2474 = vmatpush.bf16.msrb.mxu2 %v3529_v60  ;;  %v3485_v32 = vor.u32 %v3947_v27, %v3484_v21  ;;  %v3911_v60 = vld [vmem:[#allocation10 + $0xd4] sm:$0xf0]  ;;  %v3276_v21 = vld [vmem:[#allocation10 + $0x48] sm:$0xf] }
 0x195   :  { %v1363_v12 = vadd.f32 %v1362_v61, %v1349_v58  ;;  %v1412_v62 = vadd.f32 %v1404_v31, %v1403_v40  ;;  %v3452_v40 = vld [vmem:[#allocation10 + $0x1a8] sm:$0xf]  ;;  %v3895_v27 = vld [vmem:[#allocation10 + $0x54] sm:$0xf0] }
 0x197   :  { %v1377_v23 = vadd.f32 %v1376_v0, %v1363_v12  ;;  %v1413_v61 = vadd.f32 %v1412_v62, %v1405_v36  ;;  %v3497_v0 = vor.u32 %v3948_v7, %v3494_v63  ;;  %2490 = vmatpush.bf16.msrb.mxu3 %v3625_v11  ;;  %v3939_v36 = vld [vmem:[#allocation10 + $0x1b4] sm:$0xf0]  ;;  %v3325_v62 = vor.u32 %v3907_v49, %v3324_v48  ;;  %v3308_v7 = vld [vmem:[#allocation10 + $0x88] sm:$0xf] }
 0x198   :  { %v4547_v45 = vpop.f32.mrf.mxu0  ;;  %v4549_v25 = vpop.f32.mrf.mxu1  ;;  %2475 = vmatpush.bf16.msrb.mxu2 %v3513_v6  ;;  %v3903_v63 = vld [vmem:[#allocation10 + $0x94] sm:$0xf0]  ;;  %v3692_v48 = vld [vmem:[#allocation10 + $0x388] sm:$0xf] }
 0x199   :  { %v1384_v14 = vmax.f32 %v1377_v23, 0.0  ;;  %v4011_v11 = vld [vmem:[#allocation10 + $0x3f4] sm:$0xf0] }
 0x19a   :  { %v3999_v49 = vld [vmem:[#allocation10 + $0x394] sm:$0xf0] }
 0x19b   :  { %v1402_v46 = vmul.f32 %v1394_v13, %v1384_v14 }
 0x19c   :  { %v1364_v38 = vpop.f32.mrf.mxu2  ;;  %v1378_v39 = vpop.f32.mrf.mxu3  ;;  %2476 = vmatpush.bf16.msrb.mxu2 %v3497_v0  ;;  %v3935_v0 = vld [vmem:[#allocation10 + $0x194] sm:$0xf0] }
 0x19d   :  { %v1365_v44 = vadd.f32 %v1364_v38, %v1351_v34  ;;  %v1409_v54 = vadd.f32 %v1408_v4, %v1402_v46  ;;  %v3943_v38 = vld [vmem:[#allocation10 + $0x1d4] sm:$0xf0] }
 0x19e   :  { %v3469_v47 = vor.u32 %v3943_v38, %v3468_v35  ;;  %v3260_v35 = vld [vmem:[#allocation10 + $0x28] sm:$0xf]  ;;  %v3891_v38 = vld [vmem:[#allocation10 + $0x34] sm:$0xf0] }
 0x19f   :  { %v1379_v5 = vadd.f32 %v1378_v39, %v1365_v44  ;;  %1410 = vadd.xlane.f32.xlu0 %v1409_v54  ;;  %v1582_v44 = vperm.slane %v1577_v16, 3  ;;  %v3341_v54 = vor.u32 %v3911_v60, %v3340_v33  ;;  %v3277_v33 = vor.u32 %v3895_v27, %v3276_v21  ;;  %v3905_v21 = vld [vmem:[#allocation10 + $0xac] sm:$0xf]  ;;  %v3326_v27 = vld [vmem:[#allocation10 + $0xb8] sm:$0xf0] }
 0x1a0   :  { %v1456_v55 = vpop.f32.mrf.mxu0  ;;  %v1470_v58 = vpop.f32.mrf.mxu1 }
 0x1a1   :  { %v1388_v41 = vmax.f32 %v1379_v5, 0.0 }
 0x1a3   :  { %v1406_v2 = vmul.f32 %v1394_v13, %v1388_v41  ;;  %v3453_v41 = vor.u32 %v3939_v36, %v3452_v40  ;;  %v3261_v40 = vor.u32 %v3891_v38, %v3260_v35  ;;  %v3901_v35 = vld [vmem:[#allocation10 + $0x8c] sm:$0xf]  ;;  %v3310_v38 = vld [vmem:[#allocation10 + $0x98] sm:$0xf0] }
 0x1a4   :  { %v1482_v1 = vpop.f32.mrf.mxu2  ;;  %v1496_v10 = vpop.f32.mrf.mxu3 }
 0x1a5   :  { %v1414_v12 = vadd.f32 %v1413_v61, %v1406_v2  ;;  %v3436_v61 = vld [vmem:[#allocation10 + $0x188] sm:$0xf] }
 0x1a7   :  { %1415 = vadd.xlane.f32.xlu0 %v1414_v12 }
 0x1a8   :  { %v1530_v3 = vpop.f32.mrf.mxu0  ;;  %v1544_v15 = vpop.f32.mrf.mxu1 }
 0x1a9   :  { %v1531_v53 = vadd.f32 %v1530_v3, %v4547_v45  ;;  %v1545_v13 = vadd.f32 %v1544_v15, %v4549_v25  ;;  %v3357_v25 = vor.u32 %v3915_v42, %v3356_v30  ;;  %v3724_v30 = vld [vmem:[#allocation10 + $0x3c8] sm:$0xf] }
 0x1ab   :  { %v1587_v22 = vadd.f32 %v1579_v37, %v1531_v53  ;;  %v1588_v23 = vadd.f32 %v1580_v8, %v1545_v13  ;;  %v3292_v53 = vld [vmem:[#allocation10 + $0x68] sm:$0xf] }
 0x1ac   :  { %v1484_v19 = vpop.f32.mrf.mxu2  ;;  %v1498_v20 = vpop.f32.mrf.mxu3 }
 0x1ad   :  { %v1595_v4 = vmax.f32 %v1587_v22, 0.0  ;;  %v1596_v45 = vmax.f32 %v1588_v23, 0.0  ;;  %v3420_v22 = vld [vmem:[#allocation10 + $0x168] sm:$0xf]  ;;  %v3931_v23 = vld [vmem:[#allocation10 + $0x174] sm:$0xf0] }
 0x1ae   :  { %v3421_v42 = vor.u32 %v3931_v23, %v3420_v22 }
 0x1b0   :  { %v1532_v51 = vpop.f32.mrf.mxu0  ;;  %v1546_v18 = vpop.f32.mrf.mxu1 }
 0x1b1   :  { %v1533_v29 = vadd.f32 %v1532_v51, %v1456_v55  ;;  %v1547_v24 = vadd.f32 %v1546_v18, %v1470_v58 }
 0x1b3   :  { %v1591_v56 = vadd.f32 %v1579_v37, %v1533_v29  ;;  %v1592_v26 = vadd.f32 %v1580_v8, %v1547_v24  ;;  %v3899_v37 = vld [vmem:[#allocation10 + $0x74] sm:$0xf0]  ;;  %v3596_v29 = vld [vmem:[#allocation10 + $0x2c8] sm:$0xf] }
 0x1b4   :  { %v1558_v28 = vpop.f32.mrf.mxu2  ;;  %v1572_v14 = vpop.f32.mrf.mxu3  ;;  %v3975_v24 = vld [vmem:[#allocation10 + $0x2d4] sm:$0xf0] }
 0x1b5   :  { %v1599_v59 = vmax.f32 %v1591_v56, 0.0  ;;  %v1600_v57 = vmax.f32 %v1592_v26, 0.0  ;;  %v1559_v39 = vadd.f32 %v1558_v28, %v1482_v1  ;;  %v1573_v31 = vadd.f32 %v1572_v14, %v1496_v10  ;;  %v3979_v1 = vld [vmem:[#allocation10 + $0x2f4] sm:$0xf0]  ;;  %v3740_v10 = vld [vmem:[#allocation10 + $0x3e8] sm:$0xf] }
 0x1b6   :  { %v3613_v51 = vor.u32 %v3979_v1, %v3612_v52  ;;  %v3741_v18 = vor.u32 %v4011_v11, %v3740_v10  ;;  %v4007_v56 = vld [vmem:[#allocation10 + $0x3d4] sm:$0xf0]  ;;  %v3293_v26 = vor.u32 %v3899_v37, %v3292_v53  ;;  %v3597_v28 = vor.u32 %v3975_v24, %v3596_v29  ;;  %v3909_v53 = vld [vmem:[#allocation10 + $0xcc] sm:$0xf]  ;;  %v3342_v37 = vld [vmem:[#allocation10 + $0xd8] sm:$0xf0] }
 0x1b7   :  { %v4564_v34 = vpack.c.bf16 %v1599_v59, %v1595_v4  ;;  %v4566_v46 = vpack.c.bf16 %v1600_v57, %v1596_v45  ;;  %v1589_v9 = vadd.f32 %v1581_v43, %v1559_v39  ;;  %v1590_v55 = vadd.f32 %v1582_v44, %v1573_v31  ;;  %v3404_v4 = vld [vmem:[#allocation10 + $0x148] sm:$0xf]  ;;  %v3927_v45 = vld [vmem:[#allocation10 + $0x154] sm:$0xf0] }
 0x1b8   :  { %v3725_v14 = vor.u32 %v4007_v56, %v3724_v30  ;;  %v3580_v59 = vld [vmem:[#allocation10 + $0x2a8] sm:$0xf]  ;;  %v3971_v57 = vld [vmem:[#allocation10 + $0x2b4] sm:$0xf0]  ;;  %v3405_v60 = vor.u32 %v3927_v45, %v3404_v4  ;;  %v3345_v30 = vor.u32 %v3909_v53, %v3342_v37  ;;  %v3889_v53 = vld [vmem:[#allocation10 + $0x2c] sm:$0xf] }
 0x1b9   :  { %2393 = vmatmul.bf16.vlgmr.msra.gmra.mxu0 %v4564_v34  ;;  %2407 = vmatmul.bf16.vlgmr.msra.gmra.mxu1 %v4566_v46  ;;  %v1597_v12 = vmax.f32 %v1589_v9, 0.0  ;;  %v1598_v3 = vmax.f32 %v1590_v55, 0.0  ;;  %v3581_v39 = vor.u32 %v3971_v57, %v3580_v59  ;;  %v3388_v31 = vld [vmem:[#allocation10 + $0x128] sm:$0xf]  ;;  %v3955_v24 = vld [vmem:[#allocation10 + $0x234] sm:$0xf0] }
 0x1ba   :  { %2497 = vmatpush.bf16.msra.mxu0 %v3357_v25  ;;  %2511 = vmatpush.bf16.msra.mxu1 %v3485_v32  ;;  %v3708_v25 = vld [vmem:[#allocation10 + $0x3a8] sm:$0xf]  ;;  %v4003_v32 = vld [vmem:[#allocation10 + $0x3b4] sm:$0xf0]  ;;  %v3262_v37 = vld [vmem:[#allocation10 + $0x38] sm:$0xf0] }
 0x1bb   :  { %v3372_v9 = vld [vmem:[#allocation10 + $0x108] sm:$0xf]  ;;  %v3951_v57 = vld [vmem:[#allocation10 + $0x214] sm:$0xf0] }
 0x1bc   :  { %v1560_v5 = vpop.f32.mrf.mxu2  ;;  %v1574_v6 = vpop.f32.mrf.mxu3  ;;  %v3516_v29 = vld [vmem:[#allocation10 + $0x228] sm:$0xf] }
 0x1bd   :  { %v1561_v58 = vadd.f32 %v1560_v5, %v1484_v19  ;;  %v1575_v50 = vadd.f32 %v1574_v6, %v1498_v20  ;;  %v3309_v19 = vor.u32 %v3903_v63, %v3308_v7  ;;  %v3437_v20 = vor.u32 %v3935_v0, %v3436_v61  ;;  %v3244_v5 = vld [vmem:[#allocation10 + $0x8] sm:$0xf]  ;;  %v3887_v6 = vld [vmem:[#allocation10 + $0x14] sm:$0xf0]  ;;  %v3945_v61 = vld [vmem:[#allocation10 + $0x1ec] sm:$0xf] }
 0x1be   :  { %2498 = vmatpush.bf16.msra.mxu0 %v3341_v54  ;;  %2512 = vmatpush.bf16.msra.mxu1 %v3469_v47  ;;  %v3564_v54 = vld [vmem:[#allocation10 + $0x288] sm:$0xf]  ;;  %v3967_v47 = vld [vmem:[#allocation10 + $0x294] sm:$0xf0]  ;;  %v3486_v0 = vld [vmem:[#allocation10 + $0x1f8] sm:$0xf0]  ;;  %v3245_v52 = vor.u32 %v3887_v6, %v3244_v5  ;;  %v3517_v4 = vor.u32 %v3955_v24, %v3516_v29 }
 0x1bf   :  { %v1593_v17 = vadd.f32 %v1581_v43, %v1561_v58  ;;  %v1594_v2 = vadd.f32 %v1582_v44, %v1575_v50  ;;  %v3709_v43 = vor.u32 %v4003_v32, %v3708_v25  ;;  %v3923_v44 = vld [vmem:[#allocation10 + $0x134] sm:$0xf0]  ;;  %v3565_v55 = vor.u32 %v3967_v47, %v3564_v54  ;;  %v3676_v7 = vld [vmem:[#allocation10 + $0x368] sm:$0xf]  ;;  %v4009_v54 = vld [vmem:[#allocation10 + $0x3ec] sm:$0xf] }
 0x1c0   :  { %v3389_v36 = vor.u32 %v3923_v44, %v3388_v31  ;;  %v3693_v58 = vor.u32 %v3999_v49, %v3692_v48  ;;  %v3919_v50 = vld [vmem:[#allocation10 + $0x114] sm:$0xf0]  ;;  %v3500_v59 = vld [vmem:[#allocation10 + $0x208] sm:$0xf]  ;;  %v3329_v32 = vor.u32 %v3905_v21, %v3326_v27  ;;  %v3977_v31 = vld [vmem:[#allocation10 + $0x2ec] sm:$0xf] }
 0x1c1   :  { %v1601_v15 = vmax.f32 %v1593_v17, 0.0  ;;  %v1602_v16 = vmax.f32 %v1594_v2, 0.0  ;;  %v3995_v63 = vld [vmem:[#allocation10 + $0x374] sm:$0xf0]  ;;  %v3913_v17 = vld [vmem:[#allocation10 + $0xec] sm:$0xf]  ;;  %v3373_v1 = vor.u32 %v3919_v50, %v3372_v9  ;;  %v3501_v48 = vor.u32 %v3951_v57, %v3500_v59 }
 0x1c2   :  { %2499 = vmatpush.bf16.msra.mxu0 %v3325_v62  ;;  %2513 = vmatpush.bf16.msra.mxu1 %v3453_v41  ;;  %v3548_v62 = vld [vmem:[#allocation10 + $0x268] sm:$0xf]  ;;  %v3963_v41 = vld [vmem:[#allocation10 + $0x274] sm:$0xf0]  ;;  %v3358_v2 = vld [vmem:[#allocation10 + $0xf8] sm:$0xf0]  ;;  %v3677_v11 = vor.u32 %v3995_v63, %v3676_v7 }
 0x1c3   :  { %v4570_v13 = vpack.c.bf16 %v1601_v15, %v1597_v12  ;;  %v4572_v8 = vpack.c.bf16 %v1602_v16, %v1598_v3  ;;  %v3549_v10 = vor.u32 %v3963_v41, %v3548_v62  ;;  %v3532_v12 = vld [vmem:[#allocation10 + $0x248] sm:$0xf]  ;;  %v3959_v3 = vld [vmem:[#allocation10 + $0x254] sm:$0xf0]  ;;  %v3361_v15 = vor.u32 %v3913_v17, %v3358_v2  ;;  %v3614_v44 = vld [vmem:[#allocation10 + $0x2f8] sm:$0xf0] }
 0x1c4   :  { %v3489_v16 = vor.u32 %v3945_v61, %v3486_v0  ;;  %v3533_v22 = vor.u32 %v3959_v3, %v3532_v12  ;;  %v3628_v25 = vld [vmem:[#allocation10 + $0x308] sm:$0xf]  ;;  %v3742_v47 = vld [vmem:[#allocation10 + $0x3f8] sm:$0xf0]  ;;  %v3897_v5 = vld [vmem:[#allocation10 + $0x6c] sm:$0xf]  ;;  %v3617_v9 = vor.u32 %v3977_v31, %v3614_v44 }
 0x1c5   :  { %2421 = vmatmul.bf16.vlgmr.msra.gmra.mxu2 %v4570_v13  ;;  %2435 = vmatmul.bf16.vlgmr.msra.gmra.mxu3 %v4572_v8  ;;  %v3294_v6 = vld [vmem:[#allocation10 + $0x78] sm:$0xf0]  ;;  %v3973_v62 = vld [vmem:[#allocation10 + $0x2cc] sm:$0xf] }
 0x1c6   :  { %2500 = vmatpush.bf16.msra.mxu0 %v3309_v19  ;;  %2514 = vmatpush.bf16.msra.mxu1 %v3437_v20  ;;  %v3660_v19 = vld [vmem:[#allocation10 + $0x348] sm:$0xf]  ;;  %v3991_v20 = vld [vmem:[#allocation10 + $0x354] sm:$0xf0]  ;;  %v3422_v50 = vld [vmem:[#allocation10 + $0x178] sm:$0xf0]  ;;  %v3297_v17 = vor.u32 %v3897_v5, %v3294_v6 }
 0x1c7   :  { %2525 = vmatpush.bf16.msra.mxu2 %v3613_v51  ;;  %2539 = vmatpush.bf16.msra.mxu3 %v3741_v18  ;;  %v3941_v51 = vld [vmem:[#allocation10 + $0x1cc] sm:$0xf]  ;;  %v3470_v18 = vld [vmem:[#allocation10 + $0x1d8] sm:$0xf0]  ;;  %v3661_v23 = vor.u32 %v3991_v20, %v3660_v19 }
 0x1c8   :  { %v3473_v56 = vor.u32 %v3941_v51, %v3470_v18  ;;  %v3598_v41 = vld [vmem:[#allocation10 + $0x2d8] sm:$0xf0]  ;;  %v4005_v7 = vld [vmem:[#allocation10 + $0x3cc] sm:$0xf] }
 0x1c9   :  { %2449 = vmatmul.bf16.vlgmr.msrb.gmra.mxu0 %v4564_v34  ;;  %2463 = vmatmul.bf16.vlgmr.msrb.gmra.mxu1 %v4566_v46  ;;  %v3726_v63 = vld [vmem:[#allocation10 + $0x3d8] sm:$0xf0]  ;;  %v3893_v61 = vld [vmem:[#allocation10 + $0x4c] sm:$0xf] }
 0x1ca   :  { %2501 = vmatpush.bf16.msra.mxu0 %v3293_v26  ;;  %2515 = vmatpush.bf16.msra.mxu1 %v3421_v42  ;;  %v3644_v26 = vld [vmem:[#allocation10 + $0x328] sm:$0xf]  ;;  %v3987_v42 = vld [vmem:[#allocation10 + $0x334] sm:$0xf0]  ;;  %v3278_v0 = vld [vmem:[#allocation10 + $0x58] sm:$0xf0] }
 0x1cb   :  { %2526 = vmatpush.bf16.msra.mxu2 %v3597_v28  ;;  %2540 = vmatpush.bf16.msra.mxu3 %v3725_v14  ;;  %v3937_v28 = vld [vmem:[#allocation10 + $0x1ac] sm:$0xf]  ;;  %v3454_v14 = vld [vmem:[#allocation10 + $0x1b8] sm:$0xf0]  ;;  %v3645_v45 = vor.u32 %v3987_v42, %v3644_v26  ;;  %v3281_v19 = vor.u32 %v3893_v61, %v3278_v0  ;;  %v3265_v26 = vor.u32 %v3889_v53, %v3262_v37 }
 0x1cc   :  { %v3969_v12 = vld [vmem:[#allocation10 + $0x2ac] sm:$0xf]  ;;  %v3582_v3 = vld [vmem:[#allocation10 + $0x2b8] sm:$0xf0] }
 0x1cd   :  { %v3585_v51 = vor.u32 %v3969_v12, %v3582_v3  ;;  %v3965_v29 = vld [vmem:[#allocation10 + $0x28c] sm:$0xf]  ;;  %v3566_v24 = vld [vmem:[#allocation10 + $0x298] sm:$0xf0] }
 0x1ce   :  { %2502 = vmatpush.bf16.msra.mxu0 %v3277_v33  ;;  %2516 = vmatpush.bf16.msra.mxu1 %v3405_v60  ;;  %v3457_v33 = vor.u32 %v3937_v28, %v3454_v14  ;;  %v3983_v60 = vld [vmem:[#allocation10 + $0x314] sm:$0xf0]  ;;  %v3885_v21 = vld [vmem:[#allocation10 + $0xc] sm:$0xf]  ;;  %v3246_v27 = vld [vmem:[#allocation10 + $0x18] sm:$0xf0]  ;;  %v3569_v28 = vor.u32 %v3965_v29, %v3566_v24 }
 0x1cf   :  { %2527 = vmatpush.bf16.msra.mxu2 %v3581_v39  ;;  %2541 = vmatpush.bf16.msra.mxu3 %v3709_v43  ;;  %v3933_v39 = vld [vmem:[#allocation10 + $0x18c] sm:$0xf]  ;;  %v3438_v43 = vld [vmem:[#allocation10 + $0x198] sm:$0xf0]  ;;  %v3629_v49 = vor.u32 %v3983_v60, %v3628_v25 }
 0x1d0   :  { %v3961_v59 = vld [vmem:[#allocation10 + $0x26c] sm:$0xf]  ;;  %v3550_v57 = vld [vmem:[#allocation10 + $0x278] sm:$0xf0] }
 0x1d1   :  { %v3993_v25 = vld [vmem:[#allocation10 + $0x36c] sm:$0xf]  ;;  %v3662_v44 = vld [vmem:[#allocation10 + $0x358] sm:$0xf0] }
 0x1d2   :  { %2503 = vmatpush.bf16.msra.mxu0 %v3261_v40  ;;  %2517 = vmatpush.bf16.msra.mxu1 %v3389_v36  ;;  %v3313_v40 = vor.u32 %v3901_v35, %v3310_v38  ;;  %v3441_v36 = vor.u32 %v3933_v39, %v3438_v43  ;;  %v3553_v35 = vor.u32 %v3961_v59, %v3550_v57  ;;  %v3957_v39 = vld [vmem:[#allocation10 + $0x24c] sm:$0xf]  ;;  %v3534_v43 = vld [vmem:[#allocation10 + $0x258] sm:$0xf0] }
 0x1d3   :  { %2528 = vmatpush.bf16.msra.mxu2 %v3565_v55  ;;  %2542 = vmatpush.bf16.msra.mxu3 %v3693_v58  ;;  %v3745_v55 = vor.u32 %v4009_v54, %v3742_v47  ;;  %v3929_v58 = vld [vmem:[#allocation10 + $0x16c] sm:$0xf]  ;;  %v3537_v54 = vor.u32 %v3957_v39, %v3534_v43 }
 0x1d4   :  { %v3425_v2 = vor.u32 %v3929_v58, %v3422_v50  ;;  %v3989_v31 = vld [vmem:[#allocation10 + $0x34c] sm:$0xf]  ;;  %v3630_v50 = vld [vmem:[#allocation10 + $0x318] sm:$0xf0] }
 0x1d5   :  { %2477 = vmatmul.bf16.vlgmr.msrb.gmra.mxu2 %v4570_v13  ;;  %2491 = vmatmul.bf16.vlgmr.msrb.gmra.mxu3 %v4572_v8  ;;  %v3665_v47 = vor.u32 %v3989_v31, %v3662_v44  ;;  %v3981_v58 = vld [vmem:[#allocation10 + $0x30c] sm:$0xf] }
 0x1d6   :  { %2504 = vmatpush.bf16.msra.mxu0 %v3245_v52  ;;  %2518 = vmatpush.bf16.msra.mxu1 %v3373_v1  ;;  %v3601_v52 = vor.u32 %v3973_v62, %v3598_v41  ;;  %v3729_v1 = vor.u32 %v4005_v7, %v3726_v63  ;;  %v3633_v41 = vor.u32 %v3981_v58, %v3630_v50 }
 0x1d7   :  { %2529 = vmatpush.bf16.msra.mxu2 %v3549_v10  ;;  %2543 = vmatpush.bf16.msra.mxu3 %v3677_v11  ;;  %v3925_v10 = vld [vmem:[#allocation10 + $0x14c] sm:$0xf]  ;;  %v3406_v11 = vld [vmem:[#allocation10 + $0x158] sm:$0xf0] }
 0x1d8   :  { %v3409_v20 = vor.u32 %v3925_v10, %v3406_v11 }
 0x1d9   :  { %2505 = vmatmul.bf16.vlgmr.msra.gmra.mxu0 %v4564_v34  ;;  %2519 = vmatmul.bf16.vlgmr.msra.gmra.mxu1 %v4566_v46 }
 0x1da   :  { %2553 = vmatpush.bf16.msrb.mxu0 %v3361_v15  ;;  %2567 = vmatpush.bf16.msrb.mxu1 %v3489_v16  ;;  %v4001_v15 = vld [vmem:[#allocation10 + $0x3ac] sm:$0xf]  ;;  %v3710_v16 = vld [vmem:[#allocation10 + $0x3b8] sm:$0xf0] }
 0x1db   :  { %2530 = vmatpush.bf16.msra.mxu2 %v3533_v22  ;;  %2544 = vmatpush.bf16.msra.mxu3 %v3661_v23  ;;  %v3713_v18 = vor.u32 %v4001_v15, %v3710_v16  ;;  %v3921_v22 = vld [vmem:[#allocation10 + $0x12c] sm:$0xf]  ;;  %v3390_v23 = vld [vmem:[#allocation10 + $0x138] sm:$0xf0] }
 0x1dc   :  { %v3393_v42 = vor.u32 %v3921_v22, %v3390_v23 }
 0x1de   :  { %2554 = vmatpush.bf16.msrb.mxu0 %v3345_v30  ;;  %2568 = vmatpush.bf16.msrb.mxu1 %v3473_v56  ;;  %v3997_v30 = vld [vmem:[#allocation10 + $0x38c] sm:$0xf]  ;;  %v3694_v56 = vld [vmem:[#allocation10 + $0x398] sm:$0xf0] }
 0x1df   :  { %2531 = vmatpush.bf16.msra.mxu2 %v3517_v4  ;;  %2545 = vmatpush.bf16.msra.mxu3 %v3645_v45  ;;  %v3697_v14 = vor.u32 %v3997_v30, %v3694_v56  ;;  %v3917_v4 = vld [vmem:[#allocation10 + $0x10c] sm:$0xf]  ;;  %v3374_v45 = vld [vmem:[#allocation10 + $0x118] sm:$0xf0] }
 0x1e0   :  { %v3377_v60 = vor.u32 %v3917_v4, %v3374_v45 }
 0x1e2   :  { %2555 = vmatpush.bf16.msrb.mxu0 %v3329_v32  ;;  %2569 = vmatpush.bf16.msrb.mxu1 %v3457_v33  ;;  %v3678_v32 = vld [vmem:[#allocation10 + $0x378] sm:$0xf0]  ;;  %v3249_v33 = vor.u32 %v3885_v21, %v3246_v27 }
 0x1e3   :  { %2532 = vmatpush.bf16.msra.mxu2 %v3501_v48  ;;  %2546 = vmatpush.bf16.msra.mxu3 %v3629_v49  ;;  %v3681_v38 = vor.u32 %v3993_v25, %v3678_v32  ;;  %v3953_v48 = vld [vmem:[#allocation10 + $0x22c] sm:$0xf]  ;;  %v3518_v49 = vld [vmem:[#allocation10 + $0x238] sm:$0xf0] }
 0x1e4   :  { %v3521_v5 = vor.u32 %v3953_v48, %v3518_v49 }
 0x1e6   :  { %2556 = vmatpush.bf16.msrb.mxu0 %v3313_v40  ;;  %2570 = vmatpush.bf16.msrb.mxu1 %v3441_v36  ;;  %v3985_v40 = vld [vmem:[#allocation10 + $0x32c] sm:$0xf]  ;;  %v3646_v36 = vld [vmem:[#allocation10 + $0x338] sm:$0xf0] }
 0x1e7   :  { %2581 = vmatpush.bf16.msrb.mxu2 %v3617_v9  ;;  %2595 = vmatpush.bf16.msrb.mxu3 %v3745_v55  ;;  %v3649_v6 = vor.u32 %v3985_v40, %v3646_v36  ;;  %v3949_v9 = vld [vmem:[#allocation10 + $0x20c] sm:$0xf]  ;;  %v3502_v55 = vld [vmem:[#allocation10 + $0x218] sm:$0xf0] }
 0x1e8   :  { %2533 = vmatmul.bf16.vlgmr.msra.gmra.mxu2 %v4570_v13  ;;  %2547 = vmatmul.bf16.vlgmr.msra.gmra.mxu3 %v4572_v8  ;;  %v3505_v62 = vor.u32 %v3949_v9, %v3502_v55 }
 0x1ea   :  { %2557 = vmatpush.bf16.msrb.mxu0 %v3297_v17  ;;  %2571 = vmatpush.bf16.msrb.mxu1 %v3425_v2 }
 0x1eb   :  { %2582 = vmatpush.bf16.msrb.mxu2 %v3601_v52  ;;  %2596 = vmatpush.bf16.msrb.mxu3 %v3729_v1 }
 0x1ee   :  { %2558 = vmatpush.bf16.msrb.mxu0 %v3281_v19  ;;  %2572 = vmatpush.bf16.msrb.mxu1 %v3409_v20 }
 0x1ef   :  { %2583 = vmatpush.bf16.msrb.mxu2 %v3585_v51  ;;  %2597 = vmatpush.bf16.msrb.mxu3 %v3713_v18 }
 0x1f2   :  { %2559 = vmatpush.bf16.msrb.mxu0 %v3265_v26  ;;  %2573 = vmatpush.bf16.msrb.mxu1 %v3393_v42 }
 0x1f3   :  { %2584 = vmatpush.bf16.msrb.mxu2 %v3569_v28  ;;  %2598 = vmatpush.bf16.msrb.mxu3 %v3697_v14 }
 0x1f6   :  { %2560 = vmatpush.bf16.msrb.mxu0 %v3249_v33  ;;  %2574 = vmatpush.bf16.msrb.mxu1 %v3377_v60 }
 0x1f7   :  { %2585 = vmatpush.bf16.msrb.mxu2 %v3553_v35  ;;  %2599 = vmatpush.bf16.msrb.mxu3 %v3681_v38  ;;  %v2617_v35 = vld [vmem:[%s4610_s13] sm:$0xf] }
 0x1f8   :  { %v2619_v36 = vperm.slane %v2617_v35, 0  ;;  %v2621_v9 = vperm.slane %v2617_v35, 2 }
 0x1f9   :  { %2561 = vmatmul.bf16.vlgmr.msrb.gmra.mxu0 %v4564_v34  ;;  %2575 = vmatmul.bf16.vlgmr.msrb.gmra.mxu1 %v4566_v46 }
 0x1fb   :  { %2586 = vmatpush.bf16.msrb.mxu2 %v3537_v54  ;;  %2600 = vmatpush.bf16.msrb.mxu3 %v3665_v47  ;;  %v2620_v47 = vperm.slane %v2617_v35, 1 }
 0x1ff   :  { %2587 = vmatpush.bf16.msrb.mxu2 %v3521_v5  ;;  %2601 = vmatpush.bf16.msrb.mxu3 %v3649_v6 }
 0x203   :  { %2588 = vmatpush.bf16.msrb.mxu2 %v3505_v62  ;;  %2602 = vmatpush.bf16.msrb.mxu3 %v3633_v41 }
 0x206   :  { %2589 = vmatmul.bf16.vlgmr.msrb.gmra.mxu2 %v4570_v13  ;;  %2603 = vmatmul.bf16.vlgmr.msrb.gmra.mxu3 %v4572_v8  ;;  %v1735_v13 = vld [vmem:[#allocation12] sm:$0xf] }
 0x207   :  { %v1738_v8 = vperm.slane %v1735_v13, 1  ;;  %v1737_v53 = vperm.slane %v1735_v13, 0  ;;  %v1739_v37 = vperm.slane %v1735_v13, 2  ;;  %v1740_v45 = vperm.slane %v1735_v13, 3 }
 0x236   :  { %v2394_v34 = vpop.f32.mrf.mxu0  ;;  %v2408_v46 = vpop.f32.mrf.mxu1 }
 0x237   :  { %v2395_v29 = vadd.f32 %v2394_v34, %v1737_v53 }
 0x239   :  { %v2409_v56 = vadd.f32 %v2408_v46, %v2395_v29 }
 0x23e   :  { %v2396_v7 = vpop.f32.mrf.mxu0  ;;  %v2410_v2 = vpop.f32.mrf.mxu1 }
 0x23f   :  { %v2397_v59 = vadd.f32 %v2396_v7, %v1737_v53 }
 0x241   :  { %v2411_v31 = vadd.f32 %v2410_v2, %v2397_v59  ;;  %v2622_v2 = vperm.slane %v2617_v35, 3 }
 0x246   :  { %v2450_v61 = vpop.f32.mrf.mxu0  ;;  %v2464_v1 = vpop.f32.mrf.mxu1 }
 0x247   :  { %v2451_v23 = vadd.f32 %v2450_v61, %v1738_v8 }
 0x248   :  { %v2422_v63 = vpop.f32.mrf.mxu2  ;;  %v2436_v17 = vpop.f32.mrf.mxu3 }
 0x249   :  { %v2465_v30 = vadd.f32 %v2464_v1, %v2451_v23  ;;  %v2423_v28 = vadd.f32 %v2422_v63, %v2409_v56 }
 0x24b   :  { %v2437_v60 = vadd.f32 %v2436_v17, %v2423_v28 }
 0x24d   :  { %v2609_v40 = vmax.f32 %v2437_v60, 0.0 }
 0x24e   :  { %v2452_v10 = vpop.f32.mrf.mxu0  ;;  %v2466_v3 = vpop.f32.mrf.mxu1 }
 0x24f   :  { %v2453_v14 = vadd.f32 %v2452_v10, %v1738_v8  ;;  %v2627_v63 = vmul.f32 %v2619_v36, %v2609_v40 }
 0x250   :  { %v2424_v0 = vpop.f32.mrf.mxu2  ;;  %v2438_v52 = vpop.f32.mrf.mxu3 }
 0x251   :  { %v2467_v38 = vadd.f32 %v2466_v3, %v2453_v14  ;;  %v2425_v5 = vadd.f32 %v2424_v0, %v2411_v31 }
 0x253   :  { %v2439_v17 = vadd.f32 %v2438_v52, %v2425_v5 }
 0x256   :  { %v2506_v15 = vpop.f32.mrf.mxu0  ;;  %v2520_v20 = vpop.f32.mrf.mxu1 }
 0x257   :  { %v2507_v24 = vadd.f32 %v2506_v15, %v1739_v37  ;;  %v2613_v15 = vmax.f32 %v2439_v17, 0.0 }
 0x258   :  { %v2478_v11 = vpop.f32.mrf.mxu2  ;;  %v2492_v12 = vpop.f32.mrf.mxu3 }
 0x259   :  { %v2521_v42 = vadd.f32 %v2520_v20, %v2507_v24  ;;  %v2479_v21 = vadd.f32 %v2478_v11, %v2465_v30  ;;  %v2631_v52 = vmul.f32 %v2619_v36, %v2613_v15 }
 0x25b   :  { %v2493_v32 = vadd.f32 %v2492_v12, %v2479_v21  ;;  %v1411_v21 = vpop.xlane.xlu0 %1410 }
 0x25d   :  { %v2610_v54 = vmax.f32 %v2493_v32, 0.0 }
 0x25e   :  { %v2508_v51 = vpop.f32.mrf.mxu0  ;;  %v2522_v26 = vpop.f32.mrf.mxu1 }
 0x25f   :  { %v2509_v33 = vadd.f32 %v2508_v51, %v1739_v37  ;;  %v2628_v34 = vmul.f32 %v2620_v47, %v2610_v54 }
 0x260   :  { %v2480_v16 = vpop.f32.mrf.mxu2  ;;  %v2494_v19 = vpop.f32.mrf.mxu3 }
 0x261   :  { %v2523_v48 = vadd.f32 %v2522_v26, %v2509_v33  ;;  %v2481_v49 = vadd.f32 %v2480_v16, %v2467_v38  ;;  %v2635_v0 = vadd.f32 %v2628_v34, %v2627_v63 }
 0x263   :  { %v2495_v46 = vadd.f32 %v2494_v19, %v2481_v49 }
 0x265   :  { %v2614_v12 = vmax.f32 %v2495_v46, 0.0 }
 0x267   :  { %v2632_v51 = vmul.f32 %v2620_v47, %v2614_v12 }
 0x269   :  { %v2640_v24 = vadd.f32 %v2632_v51, %v2631_v52 }
 0x26b   :  { %v2534_v18 = vpop.f32.mrf.mxu2  ;;  %v2548_v22 = vpop.f32.mrf.mxu3 }
 0x26c   :  { %v2535_v4 = vadd.f32 %v2534_v18, %v2521_v42 }
 0x26e   :  { %v2549_v39 = vadd.f32 %v2548_v22, %v2535_v4 }
 0x270   :  { %v2611_v6 = vmax.f32 %v2549_v39, 0.0 }
 0x272   :  { %v2629_v61 = vmul.f32 %v2621_v9, %v2611_v6 }
 0x273   :  { %v2536_v57 = vpop.f32.mrf.mxu2  ;;  %v2550_v25 = vpop.f32.mrf.mxu3 }
 0x274   :  { %v2537_v55 = vadd.f32 %v2536_v57, %v2523_v48  ;;  %v2636_v53 = vadd.f32 %v2635_v0, %v2629_v61 }
 0x276   :  { %v2562_v27 = vpop.f32.mrf.mxu0  ;;  %v2576_v44 = vpop.f32.mrf.mxu1  ;;  %v2551_v1 = vadd.f32 %v2550_v25, %v2537_v55 }
 0x277   :  { %v2563_v43 = vadd.f32 %v2562_v27, %v1740_v45  ;;  %v4022_v27 = vld [vmem:[#allocation13] ss:$0 sm:$0xff] }
 0x278   :  { %v2615_v13 = vmax.f32 %v2551_v1, 0.0 }
 0x279   :  { %v2577_v58 = vadd.f32 %v2576_v44, %v2563_v43 }
 0x27a   :  { %v2633_v23 = vmul.f32 %v2621_v9, %v2615_v13 }
 0x27c   :  { %v2641_v26 = vadd.f32 %v2640_v24, %v2633_v23 }
 0x27e   :  { %v2564_v50 = vpop.f32.mrf.mxu0  ;;  %v2578_v16 = vpop.f32.mrf.mxu1 }
 0x27f   :  { %v2565_v10 = vadd.f32 %v2564_v50, %v1740_v45  ;;  %v1416_v45 = vpop.xlane.xlu0 %1415 }
 0x281   :  { %v2579_v20 = vadd.f32 %v2578_v16, %v2565_v10 }
 0x289   :  { %v2590_v62 = vpop.f32.mrf.mxu2  ;;  %v2604_v41 = vpop.f32.mrf.mxu3 }
 0x28a   :  { %v2591_v7 = vadd.f32 %v2590_v62, %v2577_v58 }
 0x28c   :  { %v2605_v11 = vadd.f32 %v2604_v41, %v2591_v7 }
 0x28e   :  { %v2612_v3 = vmax.f32 %v2605_v11, 0.0 }
 0x290   :  { %v2630_v8 = vmul.f32 %v2622_v2, %v2612_v3 }
 0x291   :  { %v2592_v37 = vpop.f32.mrf.mxu2  ;;  %v2606_v22 = vpop.f32.mrf.mxu3 }
 0x292   :  { %v2593_v19 = vadd.f32 %v2592_v37, %v2579_v20  ;;  %v2637_v18 = vadd.f32 %v2636_v53, %v2630_v8 }
 0x294   :  { %v2607_v29 = vadd.f32 %v2606_v22, %v2593_v19  ;;  %2638 = vadd.xlane.f32.xlu1 %v2637_v18 }
 0x296   :  { %v2616_v30 = vmax.f32 %v2607_v29, 0.0 }
 0x298   :  { %v2634_v56 = vmul.f32 %v2622_v2, %v2616_v30 }
 0x29a   :  { %v2642_v42 = vadd.f32 %v2641_v26, %v2634_v56 }
 0x29c   :  { %2643 = vadd.xlane.f32.xlu1 %v2642_v42 }
 0x307   :  { %v2639_v28 = vpop.xlane.xlu1 %2638 }
 0x308   :  { %v2646_v14 = vsel %vm2645_vm3, %v1411_v21, %v2639_v28 }
 0x309   :  { %v2652_v4 = vadd.f32 %v4022_v27, %v2646_v14 }
 0x30b   :  { %2655 = vst.msk [vmem:[%s4612_s15] sm:$0xff] %vm2654_vm4, %v2652_v4 }
 0x30f   :  { %v2644_v59 = vpop.xlane.xlu1 %2643 }
 0x310   :  { %v2647_v57 = vsel %vm2645_vm3, %v1416_v45, %v2644_v59 }
 0x311   :  { %v2653_v25 = vadd.f32 %v4022_v27, %v2647_v57 }
 0x313   :  { %2656 = vst.msk [vmem:[%s4612_s15 + $0x8] sm:$0xff] %vm2654_vm4, %v2653_v25 }
 0x314   :  { %2661 = vsyncpa [#allocation3], 1 }
 0x315   :  { %2662 = vsyncpa [#allocation5], 1 }
 0x316   :  { %2663 = vsyncpa [#allocation8], 1 }
 0x317   :  { %2664 = vsyncpa [#allocation11], 1 }
 0x318   :  { %2665 = vsyncpa [#allocation14], 1 }

</bundles_post_ra>
